<compile_context>
chip_gen: v5e
topology: v5e:2x2
jax: 0.10.0
libtpu: 0.0.40
codegen_flags: <defaults>
</compile_context>

<pallas_src>
import jax
import jax.numpy as jnp
from jax.experimental import pallas as pl
from jax.experimental.pallas import tpu as pltpu


def _round_up(v, m):
    return (v + m - 1) // m * m


def _min_sublanes(dtype):
    # (8,128) f32 tile; packed dtypes need 16 (bf16) / 32 (int8) sublanes.
    return max(8, 32 // jnp.dtype(dtype).itemsize)


def _vmem_capacity_bytes():
    try:
        return int(pltpu.get_tpu_info().vmem_capacity_bytes)
    except Exception:
        return 64 << 20  # conservative (v7x per-TensorCore)


def _num_tensorcores():
    # Heuristic: v7x has 2 TensorCores per chip; v5e/v6e have 1.
    try:
        kind = jax.devices()[0].device_kind.lower()
    except Exception:
        return 1
    return 2 if ("v7" in kind or "tpu7" in kind) else 1


# ---------------------------------------------------------------------------
# Kernels
# ---------------------------------------------------------------------------

def _mlp_q(x_ref, w1_ref, b1_ref, w2_ref, b2_ref, w3_ref, b3_ref):
    """Shared body: 3-layer MLP, bf16 MXU operands, f32 accumulation.

    Returns the lane-padded Q tile (tile_b, out_pad) in f32; padded columns
    carry a very negative bias so they never win an argmax.
    """
    # The divide_input 1/255 scale is folded into w1 once in prepare_params.
    x = x_ref[...].astype(jnp.bfloat16)

    h1 = jnp.dot(x, w1_ref[...], preferred_element_type=jnp.float32)
    h1 = jnp.maximum(h1 + b1_ref[...], 0.0)

    h2 = jnp.dot(h1.astype(jnp.bfloat16), w2_ref[...],
                 preferred_element_type=jnp.float32)
    h2 = jnp.maximum(h2 + b2_ref[...], 0.0)

    q = jnp.dot(h2.astype(jnp.bfloat16), w3_ref[...],
                preferred_element_type=jnp.float32)
    return q + b3_ref[...]


def dqn_qnet_kernel(x_ref, w1_ref, b1_ref, w2_ref, b2_ref, w3_ref, b3_ref,
                    o_ref):
    """Forward: write only the real n_actions Q columns (no padded writeback)."""
    q = _mlp_q(x_ref, w1_ref, b1_ref, w2_ref, b2_ref, w3_ref, b3_ref)
    n_act = o_ref.shape[1]
    o_ref[...] = q[:, :n_act].astype(o_ref.dtype)


def dqn_qnet_action_kernel(x_ref, w1_ref, b1_ref, w2_ref, b2_ref, w3_ref,
                           b3_ref, a_ref):
    """get_action: fused argmax epilogue, writes int32 (tile_b, 1) actions."""
    q = _mlp_q(x_ref, w1_ref, b1_ref, w2_ref, b2_ref, w3_ref, b3_ref)
    # First-occurrence argmax over lanes (padded lanes hold ~-1e30, never win).
    m = jnp.max(q, axis=1, keepdims=True)
    col = jax.lax.broadcasted_iota(jnp.int32, q.shape, 1)
    idx = jnp.where(q == m, col, q.shape[1])
    a_ref[...] = jnp.min(idx, axis=1, keepdims=True).astype(jnp.int32)


# ---------------------------------------------------------------------------
# Wrapper
# ---------------------------------------------------------------------------

def prepare_params(params, *, divide_input=True):
    """One-time parameter preprocessing (run at init / after optimizer step).

    Folds 1/255 into layer-1 weights, casts matmul operands to bf16, and
    zero-pads the Q-head to 128 output lanes for the MXU (padded bias is a
    large negative so padded lanes can never win an argmax).
    """
    w1, b1 = params["w1"], params["b1"]
    w2, b2 = params["w2"], params["b2"]
    w3, b3 = params["w3"], params["b3"]

    hidden = w1.shape[1]
    n_actions = w3.shape[1]
    out_pad = _round_up(max(n_actions, 1), 128)

    w1_eff = w1 * (1.0 / 255.0) if divide_input else w1

    w3_p = jnp.zeros((hidden, out_pad), jnp.bfloat16)
    w3_p = w3_p.at[:, :n_actions].set(w3.astype(jnp.bfloat16))
    b3_p = jnp.full((1, out_pad), -1e30, jnp.float32)
    b3_p = b3_p.at[:, :n_actions].set(b3.astype(jnp.float32))

    return dict(
        w1=w1_eff.astype(jnp.bfloat16), b1=b1.astype(jnp.float32),
        w2=w2.astype(jnp.bfloat16), b2=b2.astype(jnp.float32),
        w3=w3_p, b3=b3_p,
        n_actions=int(n_actions),
    )


def _run_pallas(kernel, x, p, out_tail, out_dtype, tile_b):
    batch, obs_dim = x.shape
    hidden = p["w1"].shape[1]
    out_pad = p["w3"].shape[1]

    sub = _min_sublanes(x.dtype)
    if tile_b is None:
        # Few, big steps: per-step pipeline overhead (~0.35 us) dominates at
        # these sizes. On a 2-TC chip keep >=2 parallel tiles for large batches.
        tile_b = min(1024, _round_up(batch, sub))
        ntc = _num_tensorcores()
        if ntc > 1 and batch >= 512:
            per_core = _round_up((batch + ntc - 1) // ntc, sub)
            tile_b = min(tile_b, per_core)
    if tile_b % sub != 0 or tile_b <= 0:
        raise ValueError(f"tile_b={tile_b} must be a positive multiple of {sub} "
                         f"for input dtype {x.dtype}")

    padded_batch = _round_up(batch, tile_b)
    if padded_batch != batch:
        x = jnp.pad(x, ((0, padded_batch - batch), (0, 0)))
    grid = (padded_batch // tile_b,)

    def wspec(shape):
        return pl.BlockSpec(shape, lambda i: (0, 0))  # VMEM-resident weights

    weight_bytes = sum(int(a.size) * a.dtype.itemsize
                       for a in (p["w1"], p["b1"], p["w2"], p["b2"],
                                 p["w3"], p["b3"]))
    x_bytes = int(x.size) * x.dtype.itemsize
    out_itemsize = jnp.dtype(out_dtype).itemsize
    out_bytes = padded_batch * out_tail * out_itemsize
    flops = 2 * padded_batch * (obs_dim * hidden + hidden * hidden
                                + hidden * out_pad)

    # VMEM budget from the real buffers (double-buffered tiles, resident
    # weights, f32 intermediates), clamped to this generation's capacity so it
    # stays legal on v7x (64 MiB per TensorCore).
    vmem_needed = (2 * tile_b * obs_dim * x.dtype.itemsize   # x tiles
                   + 2 * tile_b * out_tail * out_itemsize    # out tiles
                   + 2 * 2 * tile_b * hidden * 4             # h1/h2 f32
                   + tile_b * out_pad * 4                    # padded q
                   + 2 * weight_bytes                        # weights
                   + (4 << 20))                              # headroom
    cap = _vmem_capacity_bytes() - (8 << 20)
    vmem_limit = int(min(max(vmem_needed, 16 << 20), cap))

    out = pl.pallas_call(
        kernel,
        out_shape=jax.ShapeDtypeStruct((padded_batch, out_tail), out_dtype),
        grid=grid,
        in_specs=[
            pl.BlockSpec((tile_b, obs_dim), lambda i: (i, 0)),
            wspec((obs_dim, hidden)),
            wspec((1, hidden)),
            wspec((hidden, hidden)),
            wspec((1, hidden)),
            wspec((hidden, out_pad)),
            wspec((1, out_pad)),
        ],
        out_specs=pl.BlockSpec((tile_b, out_tail), lambda i: (i, 0)),
        compiler_params=pltpu.CompilerParams(
            dimension_semantics=("parallel",),
            vmem_limit_bytes=vmem_limit),
        cost_estimate=pl.CostEstimate(
            flops=int(flops),
            transcendentals=0,
            bytes_accessed=int(x_bytes + weight_bytes + out_bytes)),
    )(x, p["w1"], p["b1"], p["w2"], p["b2"], p["w3"], p["b3"])
    return out, batch


def dqn_qnetwork_forward(x, params, *, divide_input=True, tile_b=None):
    """Pallas forward pass of DQN_QNetwork.

    x: (batch, obs_dim) — float32 / bfloat16 / uint8 all accepted (cast to
       bf16 inside the kernel, no wrapper-side cast op).
    params: either raw params (dict with w1..b3) or the output of
       prepare_params() (preferred: avoids per-call preprocessing).
    """
    p = params if "n_actions" in params else prepare_params(
        params, divide_input=divide_input)
    q, batch = _run_pallas(dqn_qnet_kernel, x, p,
                           out_tail=p["n_actions"], out_dtype=jnp.float32,
                           tile_b=tile_b)
    return q if q.shape[0] == batch else q[:batch]


def get_action(x, params, *, divide_input=True, tile_b=None):
    """DQN_QNetwork.get_action: argmax fused into the kernel epilogue."""
    p = params if "n_actions" in params else prepare_params(
        params, divide_input=divide_input)
    a, batch = _run_pallas(dqn_qnet_action_kernel, x, p,
                           out_tail=1, out_dtype=jnp.int32, tile_b=tile_b)
    return a[:batch, 0], None


# ---------------------------------------------------------------------------
# Reference / demo
# ---------------------------------------------------------------------------

def init_params(key, obs_dim, hidden, n_actions):
    """Deterministic synthetic init (uniform, torch-Linear-like bounds)."""
    ks = jax.random.split(key, 6)

    def lin(kw, kb, fan_in, fan_out):
        bound = 1.0 / jnp.sqrt(fan_in)
        w = jax.random.uniform(kw, (fan_in, fan_out), jnp.float32,
                               -bound, bound)
        b = jax.random.uniform(kb, (1, fan_out), jnp.float32, -bound, bound)
        return w, b

    w1, b1 = lin(ks[0], ks[1], obs_dim, hidden)
    w2, b2 = lin(ks[2], ks[3], hidden, hidden)
    w3, b3 = lin(ks[4], ks[5], hidden, n_actions)
    return dict(w1=w1, b1=b1, w2=w2, b2=b2, w3=w3, b3=b3)


def _reference_forward(x, p):
    """Pure-JAX f32 reference mirroring the PyTorch semantics."""
    h = x.astype(jnp.float32) / 255.0
    h = jnp.maximum(h @ p["w1"] + p["b1"], 0.0)
    h = jnp.maximum(h @ p["w2"] + p["b2"], 0.0)
    return h @ p["w3"] + p["b3"]


if __name__ == "__main__":
    key = jax.random.PRNGKey(0)
    k_x, k_p = jax.random.split(key)

    batch, obs_dim, hidden, n_actions = 512, 128, 128, 8

    # byte-valued observations (classic DQN), carried as float32 here
    x = jax.random.uniform(k_x, (batch, obs_dim), jnp.float32, 0.0, 255.0)
    params = init_params(k_p, obs_dim, hidden, n_actions)

    # One-time preprocessing, out of the per-call path.
    prepared = prepare_params(params, divide_input=True)

    # Forward
    q = dqn_qnetwork_forward(x, prepared)
    q = jax.block_until_ready(q)
    assert q.shape == (batch, n_actions)

    # bf16 matmul operands with f32 accumulation: compare loosely vs f32 ref.
    q_ref = _reference_forward(x, params)
    max_err = float(jnp.max(jnp.abs(q - q_ref)))
    assert max_err < 5e-2, f"mismatch vs reference (max abs err {max_err})"

    # Fused-argmax get_action must agree with argmax of the kernel's own Q.
    actions, _ = get_action(x, prepared)
    actions = jax.block_until_ready(actions)
    assert actions.shape == (batch,)
    assert bool(jnp.array_equal(actions, jnp.argmax(q, axis=1))), \
        "fused argmax mismatch"

    # Non-multiple batch (exercises batch padding path).
    q_small = dqn_qnetwork_forward(x[:100], prepared)
    q_small = jax.block_until_ready(q_small)
    assert q_small.shape == (100, n_actions)
    err_small = float(jnp.max(jnp.abs(q_small - q_ref[:100])))
    assert err_small < 5e-2, f"padded-batch mismatch (max abs err {err_small})"

    print("KERNEL_OK")
</pallas_src>

<mosaic_0001>
module attributes {stable_mosaic.version = 11 : i64} {
  func.func @dqn_qnet_kernel(%arg0: i32, %arg1: memref<512x128xf32, #tpu.memory_space<vmem>>, %arg2: memref<128x128xbf16, #tpu.memory_space<vmem>>, %arg3: memref<1x128xf32, #tpu.memory_space<vmem>>, %arg4: memref<128x128xbf16, #tpu.memory_space<vmem>>, %arg5: memref<1x128xf32, #tpu.memory_space<vmem>>, %arg6: memref<128x128xbf16, #tpu.memory_space<vmem>>, %arg7: memref<1x128xf32, #tpu.memory_space<vmem>>, %arg8: memref<512x8xf32, #tpu.memory_space<vmem>>) attributes {dimension_semantics = [#tpu.dimension_semantics<parallel>], iteration_bounds = array<i64: 1>, scalar_prefetch = 0 : i64, scratch_operands = 0 : i64, tpu.core_type = #tpu.core_type<tc>, window_params = [{transform_indices = @transform_0, window_bounds = array<i64: 512, 128>}, {pipeline_mode = #tpu.pipeline_mode<synchronous>, transform_indices = @transform_1, window_bounds = array<i64: 128, 128>}, {pipeline_mode = #tpu.pipeline_mode<synchronous>, transform_indices = @transform_2, window_bounds = array<i64: 1, 128>}, {pipeline_mode = #tpu.pipeline_mode<synchronous>, transform_indices = @transform_3, window_bounds = array<i64: 128, 128>}, {pipeline_mode = #tpu.pipeline_mode<synchronous>, transform_indices = @transform_4, window_bounds = array<i64: 1, 128>}, {pipeline_mode = #tpu.pipeline_mode<synchronous>, transform_indices = @transform_5, window_bounds = array<i64: 128, 128>}, {pipeline_mode = #tpu.pipeline_mode<synchronous>, transform_indices = @transform_6, window_bounds = array<i64: 1, 128>}, {transform_indices = @transform_7, window_bounds = array<i64: 512, 8>}]} {
    %c0 = arith.constant 0 : index
    %c0_0 = arith.constant 0 : index
    %0 = vector.load %arg1[%c0, %c0_0] : memref<512x128xf32, #tpu.memory_space<vmem>>, vector<512x128xf32>
    %1 = arith.truncf %0 : vector<512x128xf32> to vector<512x128xbf16>
    %c0_1 = arith.constant 0 : index
    %c0_2 = arith.constant 0 : index
    %2 = vector.load %arg2[%c0_1, %c0_2] : memref<128x128xbf16, #tpu.memory_space<vmem>>, vector<128x128xbf16>
    %cst = arith.constant dense<0.000000e+00> : vector<512x128xf32>
    %3 = tpu.matmul %1, %2, %cst {dimension_numbers = #tpu.dot_dimension_numbers<[1], [0], [0], [1], [0, 0, 1, 1], [], []>} : vector<512x128xbf16>, vector<128x128xbf16>, vector<512x128xf32> -> vector<512x128xf32>
    %c0_3 = arith.constant 0 : index
    %c0_4 = arith.constant 0 : index
    %4 = vector.load %arg3[%c0_3, %c0_4] : memref<1x128xf32, #tpu.memory_space<vmem>>, vector<1x128xf32>
    %5 = vector.broadcast %4 : vector<1x128xf32> to vector<512x128xf32>
    %6 = arith.addf %3, %5 : vector<512x128xf32>
    %cst_5 = arith.constant 0.000000e+00 : f32
    %7 = vector.broadcast %cst_5 : f32 to vector<512x128xf32>
    %8 = arith.maximumf %6, %7 : vector<512x128xf32>
    %9 = arith.truncf %8 : vector<512x128xf32> to vector<512x128xbf16>
    %c0_6 = arith.constant 0 : index
    %c0_7 = arith.constant 0 : index
    %10 = vector.load %arg4[%c0_6, %c0_7] : memref<128x128xbf16, #tpu.memory_space<vmem>>, vector<128x128xbf16>
    %cst_8 = arith.constant dense<0.000000e+00> : vector<512x128xf32>
    %11 = tpu.matmul %9, %10, %cst_8 {dimension_numbers = #tpu.dot_dimension_numbers<[1], [0], [0], [1], [0, 0, 1, 1], [], []>} : vector<512x128xbf16>, vector<128x128xbf16>, vector<512x128xf32> -> vector<512x128xf32>
    %c0_9 = arith.constant 0 : index
    %c0_10 = arith.constant 0 : index
    %12 = vector.load %arg5[%c0_9, %c0_10] : memref<1x128xf32, #tpu.memory_space<vmem>>, vector<1x128xf32>
    %13 = vector.broadcast %12 : vector<1x128xf32> to vector<512x128xf32>
    %14 = arith.addf %11, %13 : vector<512x128xf32>
    %cst_11 = arith.constant 0.000000e+00 : f32
    %15 = vector.broadcast %cst_11 : f32 to vector<512x128xf32>
    %16 = arith.maximumf %14, %15 : vector<512x128xf32>
    %17 = arith.truncf %16 : vector<512x128xf32> to vector<512x128xbf16>
    %c0_12 = arith.constant 0 : index
    %c0_13 = arith.constant 0 : index
    %18 = vector.load %arg6[%c0_12, %c0_13] : memref<128x128xbf16, #tpu.memory_space<vmem>>, vector<128x128xbf16>
    %cst_14 = arith.constant dense<0.000000e+00> : vector<512x128xf32>
    %19 = tpu.matmul %17, %18, %cst_14 {dimension_numbers = #tpu.dot_dimension_numbers<[1], [0], [0], [1], [0, 0, 1, 1], [], []>} : vector<512x128xbf16>, vector<128x128xbf16>, vector<512x128xf32> -> vector<512x128xf32>
    %c0_15 = arith.constant 0 : index
    %c0_16 = arith.constant 0 : index
    %20 = vector.load %arg7[%c0_15, %c0_16] : memref<1x128xf32, #tpu.memory_space<vmem>>, vector<1x128xf32>
    %21 = vector.broadcast %20 : vector<1x128xf32> to vector<512x128xf32>
    %22 = arith.addf %19, %21 : vector<512x128xf32>
    %23 = vector.extract_strided_slice %22 {offsets = [0, 0], sizes = [512, 8], strides = [1, 1]} : vector<512x128xf32> to vector<512x8xf32>
    %c0_17 = arith.constant 0 : index
    %c0_18 = arith.constant 0 : index
    %24 = vector.load %arg8[%c0_17, %c0_18] : memref<512x8xf32, #tpu.memory_space<vmem>>, vector<512x8xf32>
    tpu.vector_store %arg8[%c0_17, %c0_18], %23 {strides = array<i32>} : memref<512x8xf32, #tpu.memory_space<vmem>>, vector<512x8xf32>,
    return
  }
  func.func @transform_0(%arg0: i32) -> (i32, i32) {
    %c0_i32 = arith.constant 0 : i32
    %c0_i32_0 = arith.constant 0 : i32
    return %arg0, %c0_i32 : i32, i32
  }
  func.func @transform_1(%arg0: i32) -> (i32, i32) {
    %c0_i32 = arith.constant 0 : i32
    %c0_i32_0 = arith.constant 0 : i32
    %c0_i32_1 = arith.constant 0 : i32
    return %c0_i32, %c0_i32_0 : i32, i32
  }
  func.func @transform_2(%arg0: i32) -> (i32, i32) {
    %c0_i32 = arith.constant 0 : i32
    %c0_i32_0 = arith.constant 0 : i32
    %c0_i32_1 = arith.constant 0 : i32
    return %c0_i32, %c0_i32_0 : i32, i32
  }
  func.func @transform_3(%arg0: i32) -> (i32, i32) {
    %c0_i32 = arith.constant 0 : i32
    %c0_i32_0 = arith.constant 0 : i32
    %c0_i32_1 = arith.constant 0 : i32
    return %c0_i32, %c0_i32_0 : i32, i32
  }
  func.func @transform_4(%arg0: i32) -> (i32, i32) {
    %c0_i32 = arith.constant 0 : i32
    %c0_i32_0 = arith.constant 0 : i32
    %c0_i32_1 = arith.constant 0 : i32
    return %c0_i32, %c0_i32_0 : i32, i32
  }
  func.func @transform_5(%arg0: i32) -> (i32, i32) {
    %c0_i32 = arith.constant 0 : i32
    %c0_i32_0 = arith.constant 0 : i32
    %c0_i32_1 = arith.constant 0 : i32
    return %c0_i32, %c0_i32_0 : i32, i32
  }
  func.func @transform_6(%arg0: i32) -> (i32, i32) {
    %c0_i32 = arith.constant 0 : i32
    %c0_i32_0 = arith.constant 0 : i32
    %c0_i32_1 = arith.constant 0 : i32
    return %c0_i32, %c0_i32_0 : i32, i32
  }
  func.func @transform_7(%arg0: i32) -> (i32, i32) {
    %c0_i32 = arith.constant 0 : i32
    %c0_i32_0 = arith.constant 0 : i32
    return %arg0, %c0_i32 : i32, i32
  }
}

</mosaic_0001>

<bundles_post_ra>
// kernel: tpu_custom_call.1
= control target key start
LH: loop header
LB: loop body
LE: loop exit
PB: predicated region body
PF: predicated region fallthrough
CT: control target
= control target key end

     0   :  { %12 = vsyncpa [#allocation3], 0  ;;  %s1937_s0 = inlined_call_operand.hbm [shape: f32[512,128], index: 0, kind: input, shape index: {}]   ;;  %s1938_s1 = inlined_call_operand.hbm [shape: bf16[128,128], index: 1, kind: input, shape index: {}]   ;;  %s1939_s2 = inlined_call_operand.vmem [shape: f32[1,128], index: 2, kind: input, shape index: {}]   ;;  %s1940_s3 = inlined_call_operand.hbm [shape: bf16[128,128], index: 3, kind: input, shape index: {}]   ;;  %s1941_s4 = inlined_call_operand.vmem [shape: f32[1,128], index: 4, kind: input, shape index: {}]   ;;  %s1942_s5 = inlined_call_operand.hbm [shape: bf16[128,128], index: 5, kind: input, shape index: {}]   ;;  %s1943_s6 = inlined_call_operand.vmem [shape: f32[1,128], index: 6, kind: input, shape index: {}]   ;;  %s1944_s7 = inlined_call_operand.vmem [shape: f32[512,8], index: 7, kind: output, shape index: {}]  }
   0x1   :  { %13 = vsyncpa [#allocation5], 0  ;;  %s32_s26 = sshll.u32 %s1938_s1, 4  ;;  %s33_s26 = int_to_ptr.hbm [resolvable:$true] %s32_s26 }
   0x2   :  { %14 = vsyncpa [#allocation8], 0  ;;  %s1419_s27 = smov [#allocation4]   ;;  %s19_s8 = sshll.u32 %s1937_s0, 4  ;;  %s20_s8 = int_to_ptr.hbm [resolvable:$true] %s19_s8 }
   0x3   :  { %s34_s28 = sshll.u32 %s1419_s27, 4  ;;  %s1420_s9 = smov 64   ;;  %s35_s28 = int_to_ptr.vmem [resolvable:$true] %s34_s28 }
   0x4   :  { %s1421_s10 = smov 4   ;;  %s1422_s11 = smov [#allocation2]  }
   0x5   :  { %40 = dma.hbm_to_vmem [thread:$0]  %s33_s26, 1024, %s35_s28, [#allocation5], %s1420_s9, %s1420_s9, %s1421_s10  }
   0x6   :  { %s21_s12 = sshll.u32 %s1422_s11, 4  ;;  %s1423_s13 = smov 128   ;;  %s22_s12 = int_to_ptr.vmem [resolvable:$true] %s21_s12 }
   0x7   :  { %s1424_s14 = smov 8   ;;  %s47_s16 = sshll.u32 %s1940_s3, 4  ;;  %s48_s16 = int_to_ptr.hbm [resolvable:$true] %s47_s16 }
   0x8   :  { %27 = dma.hbm_to_vmem [thread:$0]  %s20_s8, 8192, %s22_s12, [#allocation3], %s1423_s13, %s1423_s13, %s1424_s14  }
   0x9   :  { %s1425_s17 = smov [#allocation6]   ;;  %s62_s20 = sshll.u32 %s1942_s5, 4  ;;  %s63_s20 = int_to_ptr.hbm [resolvable:$true] %s62_s20 }
   0xa   :  { %s49_s18 = sshll.u32 %s1425_s17, 4  ;;  %s1426_s21 = smov [#allocation7]   ;;  %s50_s18 = int_to_ptr.vmem [resolvable:$true] %s49_s18 }
   0xb   :  { %55 = dma.hbm_to_vmem [thread:$0]  %s48_s16, 1024, %s50_s18, [#allocation5], %s1420_s9, %s1420_s9, %s1421_s10  }
   0xc   :  { %s64_s22 = sshll.u32 %s1426_s21, 4  ;;  %s65_s22 = int_to_ptr.vmem [resolvable:$true] %s64_s22 }
   0xd   :  { %70 = dma.hbm_to_vmem [thread:$0]  %s63_s20, 1024, %s65_s22, [#allocation8], %s1420_s9, %s1420_s9, %s1421_s10  }
   0xe   :  { %1413 = dma.done.wait [#allocation3], 8192  }
   0xf   :  { %1414 = vsyncadd [#allocation3], 4294959104 }
  0x10   :  { %1415 = dma.done.wait [#allocation5], 2048  }
  0x11   :  { %1416 = vsyncadd [#allocation5], 4294965248 }
  0x12   :  { %1417 = dma.done.wait [#allocation8], 1024  }
  0x13   :  { %1418 = vsyncadd [#allocation8], 4294966272  ;;  %v1263_v0 = vld [vmem:[#allocation4 + $0x38] sm:$0xff]  ;;  %v1262_v1 = vld [vmem:[#allocation4 + $0x30] sm:$0xff]  ;;  %vm1088_vm0 = vcmask 64512  }
  0x14   :  { %253 = vmatpush.bf16.msra.mxu0 %v1263_v0  ;;  %1280 = vmatpush.bf16.msra.mxu3 %v1263_v0  ;;  %v1261_v2 = vld [vmem:[#allocation4 + $0x28] sm:$0xff]  ;;  %v1260_v3 = vld [vmem:[#allocation4 + $0x20] sm:$0xff]  ;;  %v1259_v4 = vld [vmem:[#allocation4 + $0x18] sm:$0xff] }
  0x15   :  { %v1258_v5 = vld [vmem:[#allocation4 + $0x10] sm:$0xff]  ;;  %v1257_v6 = vld [vmem:[#allocation4 + $0x8] sm:$0xff]  ;;  %v1256_v7 = vld [vmem:[#allocation4] sm:$0xff] }
  0x16   :  { %v89_v8 = vld [vmem:[#allocation2] sm:$0xff]  ;;  %v90_v9 = vld [vmem:[#allocation2 + $0x8] sm:$0xff]  ;;  %v91_v11 = vld [vmem:[#allocation2 + $0x10] sm:$0xff] }
  0x17   :  { %v153_v10 = vpack.c.bf16 %v90_v9, %v89_v8  ;;  %v92_v12 = vld [vmem:[#allocation2 + $0x18] sm:$0xff]  ;;  %v93_v14 = vld [vmem:[#allocation2 + $0x20] sm:$0xff]  ;;  %v94_v15 = vld [vmem:[#allocation2 + $0x28] sm:$0xff] }
  0x18   :  { %254 = vmatpush.bf16.msra.mxu0 %v1262_v1  ;;  %1281 = vmatpush.bf16.msra.mxu3 %v1262_v1  ;;  %v154_v13 = vpack.c.bf16 %v92_v12, %v91_v11  ;;  %v155_v16 = vpack.c.bf16 %v94_v15, %v93_v14  ;;  %v95_v17 = vld [vmem:[#allocation2 + $0x30] sm:$0xff]  ;;  %v96_v18 = vld [vmem:[#allocation2 + $0x38] sm:$0xff]  ;;  %v97_v20 = vld [vmem:[#allocation2 + $0x40] sm:$0xff] }
  0x19   :  { %v156_v19 = vpack.c.bf16 %v96_v18, %v95_v17  ;;  %v98_v21 = vld [vmem:[#allocation2 + $0x48] sm:$0xff]  ;;  %v1271_v23 = vld [vmem:[#allocation6 + $0x38] sm:$0xff]  ;;  %v99_v24 = vld [vmem:[#allocation2 + $0x50] sm:$0xff] }
  0x1a   :  { %v157_v22 = vpack.c.bf16 %v98_v21, %v97_v20  ;;  %586 = vmatpush.bf16.msra.mxu1 %v1271_v23  ;;  %v100_v25 = vld [vmem:[#allocation2 + $0x58] sm:$0xff]  ;;  %v1270_v27 = vld [vmem:[#allocation6 + $0x30] sm:$0xff]  ;;  %v1269_v28 = vld [vmem:[#allocation6 + $0x28] sm:$0xff] }
  0x1b   :  { %v158_v26 = vpack.c.bf16 %v100_v25, %v99_v24  ;;  %v1268_v29 = vld [vmem:[#allocation6 + $0x20] sm:$0xff]  ;;  %v102_v31 = vld [vmem:[#allocation2 + $0x68] sm:$0xff]  ;;  %v1267_v32 = vld [vmem:[#allocation6 + $0x18] sm:$0xff] }
  0x1c   :  { %255 = vmatpush.bf16.msra.mxu0 %v1261_v2  ;;  %1282 = vmatpush.bf16.msra.mxu3 %v1261_v2  ;;  %v101_v30 = vld [vmem:[#allocation2 + $0x60] sm:$0xff]  ;;  %v1266_v34 = vld [vmem:[#allocation6 + $0x10] sm:$0xff]  ;;  %v1265_v35 = vld [vmem:[#allocation6 + $0x8] sm:$0xff] }
  0x1d   :  { %v159_v33 = vpack.c.bf16 %v102_v31, %v101_v30  ;;  %v1264_v36 = vld [vmem:[#allocation6] sm:$0xff]  ;;  %v103_v37 = vld [vmem:[#allocation2 + $0x70] sm:$0xff]  ;;  %v104_v38 = vld [vmem:[#allocation2 + $0x78] sm:$0xff] }
  0x1e   :  { %587 = vmatpush.bf16.msra.mxu1 %v1270_v27  ;;  %v160_v39 = vpack.c.bf16 %v104_v38, %v103_v37  ;;  %v105_v40 = vld [vmem:[#allocation2 + $0x80] sm:$0xff]  ;;  %v106_v41 = vld [vmem:[#allocation2 + $0x88] sm:$0xff]  ;;  %v107_v50 = vld [vmem:[#allocation2 + $0x90] sm:$0xff] }
  0x1f   :  { %v161_v42 = vpack.c.bf16 %v106_v41, %v105_v40  ;;  %v1482_v44 = vld [vmem:[%s1939_s2] ss:$0 sm:$0xff]  ;;  %v108_v51 = vld [vmem:[#allocation2 + $0x98] sm:$0xff]  ;;  %v110_v61 = vld [vmem:[#allocation2 + $0xa8] sm:$0xff] }
  0x20   :  { %256 = vmatpush.bf16.msra.mxu0 %v1260_v3  ;;  %1283 = vmatpush.bf16.msra.mxu3 %v1260_v3  ;;  %v162_v53 = vpack.c.bf16 %v108_v51, %v107_v50  ;;  %v109_v60 = vld [vmem:[#allocation2 + $0xa0] sm:$0xff]  ;;  %v138_v17 = vld [vmem:[#allocation2 + $0x188] sm:$0xff]  ;;  %v140_v30 = vld [vmem:[#allocation2 + $0x198] sm:$0xff] }
  0x21   :  { %v163_v63 = vpack.c.bf16 %v110_v61, %v109_v60  ;;  %v113_v18 = vld [vmem:[#allocation2 + $0xc0] sm:$0xff]  ;;  %v115_v31 = vld [vmem:[#allocation2 + $0xd0] sm:$0xff]  ;;  %v1279_v40 = vld [vmem:[#allocation7 + $0x38] sm:$0xff] }
  0x22   :  { %588 = vmatpush.bf16.msra.mxu1 %v1269_v28  ;;  %919 = vmatpush.bf16.msra.mxu2 %v1279_v40  ;;  %v1278_v50 = vld [vmem:[#allocation7 + $0x30] sm:$0xff] }
  0x23   :  { %v119_v61 = vld [vmem:[#allocation2 + $0xf0] sm:$0xff] }
  0x24   :  { %257 = vmatpush.bf16.msra.mxu0 %v1259_v4  ;;  %1284 = vmatpush.bf16.msra.mxu3 %v1259_v4 }
  0x26   :  { %589 = vmatpush.bf16.msra.mxu1 %v1268_v29  ;;  %920 = vmatpush.bf16.msra.mxu2 %v1278_v50 }
  0x28   :  { %258 = vmatpush.bf16.msra.mxu0 %v1258_v5  ;;  %1285 = vmatpush.bf16.msra.mxu3 %v1258_v5 }
  0x2a   :  { %590 = vmatpush.bf16.msra.mxu1 %v1267_v32 }
  0x2c   :  { %259 = vmatpush.bf16.msra.mxu0 %v1257_v6  ;;  %1286 = vmatpush.bf16.msra.mxu3 %v1257_v6  ;;  %v111_v6 = vld [vmem:[#allocation2 + $0xb0] sm:$0xff] }
  0x2e   :  { %591 = vmatpush.bf16.msra.mxu1 %v1266_v34 }
  0x30   :  { %260 = vmatpush.bf16.msra.mxu0 %v1256_v7  ;;  %1287 = vmatpush.bf16.msra.mxu3 %v1256_v7  ;;  %v112_v7 = vld [vmem:[#allocation2 + $0xb8] sm:$0xff] }
  0x31   :  { %v164_v9 = vpack.c.bf16 %v112_v7, %v111_v6  ;;  %v1273_v6 = vld [vmem:[#allocation7 + $0x8] sm:$0xff]  ;;  %v1272_v7 = vld [vmem:[#allocation7] sm:$0xff] }
  0x32   :  { %592 = vmatpush.bf16.msra.mxu1 %v1265_v35 }
  0x33   :  { %261 = vmatmul.bf16.vlgmr.msra.gmra.mxu0 %v153_v10 }
  0x34   :  { %1288 = vmatpush.bf16.msrb.mxu3 %v1271_v23 }
  0x36   :  { %593 = vmatpush.bf16.msra.mxu1 %v1264_v36 }
  0x38   :  { %1289 = vmatpush.bf16.msrb.mxu3 %v1270_v27 }
  0x3c   :  { %1290 = vmatpush.bf16.msrb.mxu3 %v1269_v28 }
  0x40   :  { %1291 = vmatpush.bf16.msrb.mxu3 %v1268_v29  ;;  %v139_v29 = vld [vmem:[#allocation2 + $0x190] sm:$0xff] }
  0x43   :  { %266 = vmatmul.bf16.gmra.mxu0 %v154_v13 }
  0x44   :  { %1292 = vmatpush.bf16.msrb.mxu3 %v1267_v32  ;;  %v116_v32 = vld [vmem:[#allocation2 + $0xd8] sm:$0xff] }
  0x48   :  { %1293 = vmatpush.bf16.msrb.mxu3 %v1266_v34 }
  0x4c   :  { %1294 = vmatpush.bf16.msrb.mxu3 %v1265_v35  ;;  %v166_v35 = vpack.c.bf16 %v116_v32, %v115_v31 }
  0x50   :  { %1295 = vmatpush.bf16.msrb.mxu3 %v1264_v36 }
  0x53   :  { %271 = vmatmul.bf16.gmra.mxu0 %v155_v16  ;;  %v137_v16 = vld [vmem:[#allocation2 + $0x180] sm:$0xff] }
  0x54   :  { %v177_v20 = vpack.c.bf16 %v138_v17, %v137_v16  ;;  %v146_v16 = vld [vmem:[#allocation2 + $0x1c8] sm:$0xff] }
  0x56   :  { %381 = vmatmul.bf16.vlgmr.msra.gmra.mxu3 %v177_v20 }
  0x57   :  { %1296 = vmatpush.bf16.msra.mxu3 %v1279_v40 }
  0x5b   :  { %1297 = vmatpush.bf16.msra.mxu3 %v1278_v50  ;;  %v126_v50 = vld [vmem:[#allocation2 + $0x128] sm:$0xff] }
  0x63   :  { %276 = vmatmul.bf16.gmra.mxu0 %v156_v19  ;;  %v114_v19 = vld [vmem:[#allocation2 + $0xc8] sm:$0xff] }
  0x73   :  { %281 = vmatmul.bf16.gmra.mxu0 %v157_v22  ;;  %v165_v22 = vpack.c.bf16 %v114_v19, %v113_v18 }
  0x83   :  { %286 = vmatmul.bf16.gmra.mxu0 %v158_v26 }
  0x93   :  { %291 = vmatmul.bf16.gmra.mxu0 %v159_v33  ;;  %v178_v33 = vpack.c.bf16 %v140_v30, %v139_v29  ;;  %v147_v29 = vld [vmem:[#allocation2 + $0x1d0] sm:$0xff]  ;;  %v148_v30 = vld [vmem:[#allocation2 + $0x1d8] sm:$0xff] }
  0x94   :  { %v182_v32 = vpack.c.bf16 %v148_v30, %v147_v29 }
  0x95   :  { %386 = vmatmul.bf16.gmra.mxu3 %v178_v33  ;;  %v1505_v33 = vld [vmem:[%s1941_s4] ss:$0 sm:$0xff] }
  0xa3   :  { %296 = vmatmul.bf16.gmra.mxu0 %v160_v39 }
  0xb0   :  { %v262_v43 = vpop.f32.mrf.mxu0 }
  0xb1   :  { %v263_v45 = vadd.f32 %v1482_v44, %v262_v43  ;;  %v141_v43 = vld [vmem:[#allocation2 + $0x1a0] sm:$0xff] }
  0xb3   :  { %301 = vmatmul.bf16.gmra.mxu0 %v161_v42  ;;  %v422_v48 = vmax.f32 %v263_v45, 0.0  ;;  %v142_v45 = vld [vmem:[#allocation2 + $0x1a8] sm:$0xff] }
  0xb8   :  { %v264_v46 = vpop.f32.mrf.mxu0 }
  0xb9   :  { %v265_v47 = vadd.f32 %v1482_v44, %v264_v46  ;;  %v117_v46 = vld [vmem:[#allocation2 + $0xe0] sm:$0xff] }
  0xbb   :  { %v423_v49 = vmax.f32 %v265_v47, 0.0  ;;  %v118_v47 = vld [vmem:[#allocation2 + $0xe8] sm:$0xff] }
  0xbc   :  { %v167_v51 = vpack.c.bf16 %v118_v47, %v117_v46 }
  0xbd   :  { %v486_v52 = vpack.c.bf16 %v423_v49, %v422_v48  ;;  %v179_v48 = vpack.c.bf16 %v142_v45, %v141_v43 }
  0xbf   :  { %594 = vmatmul.bf16.vlgmr.msra.gmra.mxu1 %v486_v52  ;;  %391 = vmatmul.bf16.gmra.mxu3 %v179_v48  ;;  %v125_v48 = vld [vmem:[#allocation2 + $0x120] sm:$0xff] }
  0xc0   :  { %v267_v54 = vpop.f32.mrf.mxu0 }
  0xc1   :  { %v268_v55 = vadd.f32 %v1482_v44, %v267_v54  ;;  %v1276_v54 = vld [vmem:[#allocation7 + $0x20] sm:$0xff] }
  0xc3   :  { %306 = vmatmul.bf16.gmra.mxu0 %v162_v53  ;;  %v424_v58 = vmax.f32 %v268_v55, 0.0  ;;  %v1277_v53 = vld [vmem:[#allocation7 + $0x28] sm:$0xff] }
  0xc4   :  { %921 = vmatpush.bf16.msra.mxu2 %v1277_v53  ;;  %1298 = vmatpush.bf16.msra.mxu3 %v1277_v53 }
  0xc8   :  { %v269_v56 = vpop.f32.mrf.mxu0  ;;  %922 = vmatpush.bf16.msra.mxu2 %v1276_v54  ;;  %1299 = vmatpush.bf16.msra.mxu3 %v1276_v54 }
  0xc9   :  { %v270_v57 = vadd.f32 %v1482_v44, %v269_v56 }
  0xcb   :  { %v425_v59 = vmax.f32 %v270_v57, 0.0 }
  0xcd   :  { %v487_v62 = vpack.c.bf16 %v425_v59, %v424_v58  ;;  %v1275_v58 = vld [vmem:[#allocation7 + $0x18] sm:$0xff] }
  0xce   :  { %923 = vmatpush.bf16.msra.mxu2 %v1275_v58  ;;  %1300 = vmatpush.bf16.msra.mxu3 %v1275_v58 }
  0xcf   :  { %599 = vmatmul.bf16.gmra.mxu1 %v487_v62  ;;  %v120_v62 = vld [vmem:[#allocation2 + $0xf8] sm:$0xff] }
  0xd0   :  { %v272_v0 = vpop.f32.mrf.mxu0 }
  0xd1   :  { %v273_v1 = vadd.f32 %v1482_v44, %v272_v0  ;;  %v144_v0 = vld [vmem:[#allocation2 + $0x1b8] sm:$0xff] }
  0xd3   :  { %311 = vmatmul.bf16.gmra.mxu0 %v163_v63  ;;  %v426_v4 = vmax.f32 %v273_v1, 0.0  ;;  %v143_v63 = vld [vmem:[#allocation2 + $0x1b0] sm:$0xff] }
  0xd8   :  { %v274_v2 = vpop.f32.mrf.mxu0 }
  0xd9   :  { %v275_v3 = vadd.f32 %v1482_v44, %v274_v2  ;;  %v180_v2 = vpack.c.bf16 %v144_v0, %v143_v63  ;;  %v382_v30 = vpop.f32.mrf.mxu3 }
  0xdb   :  { %v427_v5 = vmax.f32 %v275_v3, 0.0  ;;  %v1274_v3 = vld [vmem:[#allocation7 + $0x10] sm:$0xff]  ;;  %396 = vmatmul.bf16.gmra.mxu3 %v180_v2 }
  0xdc   :  { %924 = vmatpush.bf16.msra.mxu2 %v1274_v3  ;;  %1301 = vmatpush.bf16.msra.mxu3 %v1274_v3 }
  0xdd   :  { %v488_v8 = vpack.c.bf16 %v427_v5, %v426_v4  ;;  %v168_v4 = vpack.c.bf16 %v120_v62, %v119_v61 }
  0xdf   :  { %604 = vmatmul.bf16.gmra.mxu1 %v488_v8 }
  0xe0   :  { %v277_v10 = vpop.f32.mrf.mxu0  ;;  %925 = vmatpush.bf16.msra.mxu2 %v1273_v6  ;;  %1302 = vmatpush.bf16.msra.mxu3 %v1273_v6  ;;  %v128_v6 = vld [vmem:[#allocation2 + $0x138] sm:$0xff] }
  0xe1   :  { %v278_v11 = vadd.f32 %v1482_v44, %v277_v10 }
  0xe3   :  { %316 = vmatmul.bf16.gmra.mxu0 %v164_v9  ;;  %v428_v14 = vmax.f32 %v278_v11, 0.0 }
  0xe4   :  { %926 = vmatpush.bf16.msra.mxu2 %v1272_v7  ;;  %1303 = vmatpush.bf16.msra.mxu3 %v1272_v7  ;;  %v151_v7 = vld [vmem:[#allocation2 + $0x1f0] sm:$0xff] }
  0xe8   :  { %v279_v12 = vpop.f32.mrf.mxu0 }
  0xe9   :  { %v280_v13 = vadd.f32 %v1482_v44, %v279_v12 }
  0xeb   :  { %v429_v15 = vmax.f32 %v280_v13, 0.0  ;;  %v121_v13 = vld [vmem:[#allocation2 + $0x100] sm:$0xff] }
  0xed   :  { %v489_v21 = vpack.c.bf16 %v429_v15, %v428_v14  ;;  %v122_v14 = vld [vmem:[#allocation2 + $0x108] sm:$0xff]  ;;  %v145_v15 = vld [vmem:[#allocation2 + $0x1c0] sm:$0xff] }
  0xee   :  { %v181_v18 = vpack.c.bf16 %v146_v16, %v145_v15  ;;  %v169_v19 = vpack.c.bf16 %v122_v14, %v121_v13 }
  0xef   :  { %609 = vmatmul.bf16.gmra.mxu1 %v489_v21 }
  0xf0   :  { %v282_v23 = vpop.f32.mrf.mxu0  ;;  %401 = vmatmul.bf16.gmra.mxu3 %v181_v18 }
  0xf1   :  { %v283_v24 = vadd.f32 %v1482_v44, %v282_v23 }
  0xf3   :  { %321 = vmatmul.bf16.gmra.mxu0 %v165_v22  ;;  %v430_v27 = vmax.f32 %v283_v24, 0.0 }
  0xf8   :  { %v284_v25 = vpop.f32.mrf.mxu0 }
  0xf9   :  { %v285_v26 = vadd.f32 %v1482_v44, %v284_v25 }
  0xfb   :  { %v431_v28 = vmax.f32 %v285_v26, 0.0  ;;  %v123_v26 = vld [vmem:[#allocation2 + $0x110] sm:$0xff] }
  0xfd   :  { %v490_v34 = vpack.c.bf16 %v431_v28, %v430_v27  ;;  %v124_v28 = vld [vmem:[#allocation2 + $0x118] sm:$0xff] }
  0xff   :  { %614 = vmatmul.bf16.gmra.mxu1 %v490_v34  ;;  %v170_v34 = vpack.c.bf16 %v124_v28, %v123_v26  ;;  %v130_v26 = vld [vmem:[#allocation2 + $0x148] sm:$0xff] }
 0x100   :  { %v287_v36 = vpop.f32.mrf.mxu0  ;;  %406 = vmatmul.bf16.gmra.mxu3 %v182_v32 }
 0x101   :  { %v288_v37 = vadd.f32 %v1482_v44, %v287_v36 }
 0x103   :  { %326 = vmatmul.bf16.gmra.mxu0 %v166_v35  ;;  %v432_v41 = vmax.f32 %v288_v37, 0.0 }
 0x108   :  { %v289_v38 = vpop.f32.mrf.mxu0 }
 0x109   :  { %v290_v39 = vadd.f32 %v1482_v44, %v289_v38 }
 0x10b   :  { %v433_v42 = vmax.f32 %v290_v39, 0.0 }
 0x10d   :  { %v491_v49 = vpack.c.bf16 %v433_v42, %v432_v41 }
 0x10f   :  { %619 = vmatmul.bf16.gmra.mxu1 %v491_v49 }
 0x110   :  { %v292_v52 = vpop.f32.mrf.mxu0 }
 0x111   :  { %v293_v55 = vadd.f32 %v1482_v44, %v292_v52  ;;  %v150_v52 = vld [vmem:[#allocation2 + $0x1e8] sm:$0xff] }
 0x113   :  { %331 = vmatmul.bf16.gmra.mxu0 %v167_v51  ;;  %v434_v59 = vmax.f32 %v293_v55, 0.0  ;;  %v149_v51 = vld [vmem:[#allocation2 + $0x1e0] sm:$0xff]  ;;  %v171_v55 = vpack.c.bf16 %v126_v50, %v125_v48  ;;  %v132_v50 = vld [vmem:[#allocation2 + $0x158] sm:$0xff] }
 0x114   :  { %v183_v54 = vpack.c.bf16 %v150_v52, %v149_v51 }
 0x116   :  { %411 = vmatmul.bf16.gmra.mxu3 %v183_v54 }
 0x118   :  { %v294_v56 = vpop.f32.mrf.mxu0 }
 0x119   :  { %v295_v57 = vadd.f32 %v1482_v44, %v294_v56 }
 0x11b   :  { %v435_v60 = vmax.f32 %v295_v57, 0.0 }
 0x11d   :  { %v492_v1 = vpack.c.bf16 %v435_v60, %v434_v59 }
 0x11f   :  { %624 = vmatmul.bf16.gmra.mxu1 %v492_v1 }
 0x120   :  { %v297_v5 = vpop.f32.mrf.mxu0 }
 0x121   :  { %v298_v8 = vadd.f32 %v1482_v44, %v297_v5 }
 0x123   :  { %336 = vmatmul.bf16.gmra.mxu0 %v168_v4  ;;  %v436_v11 = vmax.f32 %v298_v8, 0.0  ;;  %v127_v4 = vld [vmem:[#allocation2 + $0x130] sm:$0xff]  ;;  %v152_v8 = vld [vmem:[#allocation2 + $0x1f8] sm:$0xff] }
 0x128   :  { %v299_v9 = vpop.f32.mrf.mxu0 }
 0x129   :  { %v300_v10 = vadd.f32 %v1482_v44, %v299_v9 }
 0x12b   :  { %v437_v12 = vmax.f32 %v300_v10, 0.0  ;;  %v184_v10 = vpack.c.bf16 %v152_v8, %v151_v7 }
 0x12d   :  { %v493_v17 = vpack.c.bf16 %v437_v12, %v436_v11  ;;  %v172_v11 = vpack.c.bf16 %v128_v6, %v127_v4  ;;  %416 = vmatmul.bf16.gmra.mxu3 %v184_v10  ;;  %v134_v10 = vld [vmem:[#allocation2 + $0x168] sm:$0xff] }
 0x12f   :  { %629 = vmatmul.bf16.gmra.mxu1 %v493_v17 }
 0x130   :  { %v302_v20 = vpop.f32.mrf.mxu0 }
 0x131   :  { %v303_v21 = vadd.f32 %v1482_v44, %v302_v20 }
 0x133   :  { %341 = vmatmul.bf16.gmra.mxu0 %v169_v19  ;;  %v438_v24 = vmax.f32 %v303_v21, 0.0 }
 0x138   :  { %v304_v22 = vpop.f32.mrf.mxu0 }
 0x139   :  { %v305_v23 = vadd.f32 %v1482_v44, %v304_v22 }
 0x13b   :  { %v439_v25 = vmax.f32 %v305_v23, 0.0 }
 0x13c   :  { %v595_v27 = vpop.f32.mrf.mxu1 }
 0x13d   :  { %v494_v31 = vpack.c.bf16 %v439_v25, %v438_v24  ;;  %v596_v36 = vadd.f32 %v1505_v33, %v595_v27  ;;  %v129_v25 = vld [vmem:[#allocation2 + $0x140] sm:$0xff] }
 0x13e   :  { %v173_v28 = vpack.c.bf16 %v130_v26, %v129_v25 }
 0x13f   :  { %634 = vmatmul.bf16.gmra.mxu1 %v494_v31  ;;  %v755_v39 = vmax.f32 %v596_v36, 0.0 }
 0x140   :  { %v307_v35 = vpop.f32.mrf.mxu0 }
 0x141   :  { %v308_v40 = vadd.f32 %v1482_v44, %v307_v35 }
 0x143   :  { %346 = vmatmul.bf16.gmra.mxu0 %v170_v34  ;;  %v440_v46 = vmax.f32 %v308_v40, 0.0 }
 0x144   :  { %v597_v37 = vpop.f32.mrf.mxu1 }
 0x145   :  { %v598_v38 = vadd.f32 %v1505_v33, %v597_v37 }
 0x147   :  { %v756_v41 = vmax.f32 %v598_v38, 0.0  ;;  %v383_v38 = vadd.f32 %v1482_v44, %v382_v30 }
 0x148   :  { %v309_v42 = vpop.f32.mrf.mxu0 }
 0x149   :  { %v310_v43 = vadd.f32 %v1482_v44, %v309_v42  ;;  %v819_v45 = vpack.c.bf16 %v756_v41, %v755_v39  ;;  %v384_v42 = vpop.f32.mrf.mxu3 }
 0x14b   :  { %v441_v47 = vmax.f32 %v310_v43, 0.0  ;;  %927 = vmatmul.bf16.vlgmr.msra.gmra.mxu2 %v819_v45 }
 0x14c   :  { %v600_v49 = vpop.f32.mrf.mxu1 }
 0x14d   :  { %v495_v53 = vpack.c.bf16 %v441_v47, %v440_v46  ;;  %v601_v57 = vadd.f32 %v1505_v33, %v600_v49  ;;  %v470_v46 = vmax.f32 %v383_v38, 0.0  ;;  %v385_v47 = vadd.f32 %v1482_v44, %v384_v42  ;;  %v131_v49 = vld [vmem:[#allocation2 + $0x150] sm:$0xff] }
 0x14f   :  { %639 = vmatmul.bf16.gmra.mxu1 %v495_v53  ;;  %v757_v60 = vmax.f32 %v601_v57, 0.0  ;;  %v471_v52 = vmax.f32 %v385_v47, 0.0  ;;  %v174_v53 = vpack.c.bf16 %v132_v50, %v131_v49 }
 0x150   :  { %v312_v56 = vpop.f32.mrf.mxu0 }
 0x151   :  { %v313_v61 = vadd.f32 %v1482_v44, %v312_v56  ;;  %v510_v54 = vpack.c.bf16 %v471_v52, %v470_v46  ;;  %v387_v56 = vpop.f32.mrf.mxu3 }
 0x153   :  { %351 = vmatmul.bf16.gmra.mxu0 %v171_v55  ;;  %v442_v2 = vmax.f32 %v313_v61, 0.0  ;;  %714 = vmatmul.bf16.vlgmr.msrb.gmra.mxu3 %v510_v54 }
 0x154   :  { %v602_v58 = vpop.f32.mrf.mxu1 }
 0x155   :  { %v603_v59 = vadd.f32 %v1505_v33, %v602_v58 }
 0x157   :  { %v758_v62 = vmax.f32 %v603_v59, 0.0 }
 0x158   :  { %v314_v63 = vpop.f32.mrf.mxu0 }
 0x159   :  { %v315_v0 = vadd.f32 %v1482_v44, %v314_v63  ;;  %v820_v1 = vpack.c.bf16 %v758_v62, %v757_v60  ;;  %v388_v63 = vadd.f32 %v1482_v44, %v387_v56 }
 0x15b   :  { %v443_v3 = vmax.f32 %v315_v0, 0.0  ;;  %932 = vmatmul.bf16.gmra.mxu2 %v820_v1  ;;  %v472_v6 = vmax.f32 %v388_v63, 0.0 }
 0x15c   :  { %v605_v5 = vpop.f32.mrf.mxu1 }
 0x15d   :  { %v496_v9 = vpack.c.bf16 %v443_v3, %v442_v2  ;;  %v606_v13 = vadd.f32 %v1505_v33, %v605_v5  ;;  %v389_v3 = vpop.f32.mrf.mxu3 }
 0x15e   :  { %v390_v7 = vadd.f32 %v1482_v44, %v389_v3 }
 0x15f   :  { %644 = vmatmul.bf16.gmra.mxu1 %v496_v9  ;;  %v759_v16 = vmax.f32 %v606_v13, 0.0  ;;  %v133_v9 = vld [vmem:[#allocation2 + $0x160] sm:$0xff] }
 0x160   :  { %v317_v12 = vpop.f32.mrf.mxu0  ;;  %v175_v13 = vpack.c.bf16 %v134_v10, %v133_v9 }
 0x161   :  { %v318_v17 = vadd.f32 %v1482_v44, %v317_v12  ;;  %v473_v12 = vmax.f32 %v390_v7, 0.0 }
 0x163   :  { %356 = vmatmul.bf16.gmra.mxu0 %v172_v11  ;;  %v444_v22 = vmax.f32 %v318_v17, 0.0 }
 0x164   :  { %v607_v14 = vpop.f32.mrf.mxu1 }
 0x165   :  { %v608_v15 = vadd.f32 %v1505_v33, %v607_v14  ;;  %v511_v14 = vpack.c.bf16 %v473_v12, %v472_v6 }
 0x167   :  { %v760_v18 = vmax.f32 %v608_v15, 0.0  ;;  %719 = vmatmul.bf16.gmra.mxu3 %v511_v14 }
 0x168   :  { %v319_v19 = vpop.f32.mrf.mxu0 }
 0x169   :  { %v320_v20 = vadd.f32 %v1482_v44, %v319_v19  ;;  %v821_v21 = vpack.c.bf16 %v760_v18, %v759_v16  ;;  %v392_v16 = vpop.f32.mrf.mxu3 }
 0x16b   :  { %v445_v23 = vmax.f32 %v320_v20, 0.0  ;;  %937 = vmatmul.bf16.gmra.mxu2 %v821_v21 }
 0x16c   :  { %v610_v24 = vpop.f32.mrf.mxu1 }
 0x16d   :  { %v497_v27 = vpack.c.bf16 %v445_v23, %v444_v22  ;;  %v611_v31 = vadd.f32 %v1505_v33, %v610_v24  ;;  %v393_v23 = vadd.f32 %v1482_v44, %v392_v16 }
 0x16f   :  { %649 = vmatmul.bf16.gmra.mxu1 %v497_v27  ;;  %v761_v35 = vmax.f32 %v611_v31, 0.0  ;;  %v474_v30 = vmax.f32 %v393_v23, 0.0 }
 0x170   :  { %v322_v29 = vpop.f32.mrf.mxu0 }
 0x171   :  { %v323_v36 = vadd.f32 %v1482_v44, %v322_v29  ;;  %v394_v27 = vpop.f32.mrf.mxu3 }
 0x172   :  { %v395_v31 = vadd.f32 %v1482_v44, %v394_v27 }
 0x173   :  { %361 = vmatmul.bf16.gmra.mxu0 %v173_v28  ;;  %v446_v43 = vmax.f32 %v323_v36, 0.0 }
 0x174   :  { %v612_v32 = vpop.f32.mrf.mxu1 }
 0x175   :  { %v613_v34 = vadd.f32 %v1505_v33, %v612_v32 }
 0x177   :  { %v762_v37 = vmax.f32 %v613_v34, 0.0  ;;  %v135_v34 = vld [vmem:[#allocation2 + $0x170] sm:$0xff] }
 0x178   :  { %v324_v39 = vpop.f32.mrf.mxu0 }
 0x179   :  { %v325_v40 = vadd.f32 %v1482_v44, %v324_v39  ;;  %v822_v41 = vpack.c.bf16 %v762_v37, %v761_v35  ;;  %v136_v35 = vld [vmem:[#allocation2 + $0x178] sm:$0xff]  ;;  %v475_v37 = vmax.f32 %v395_v31, 0.0 }
 0x17a   :  { %v176_v38 = vpack.c.bf16 %v136_v35, %v135_v34  ;;  %v1557_v35 = vld [vmem:[%s1943_s6] ss:$0 sm:$0xff] }
 0x17b   :  { %v447_v45 = vmax.f32 %v325_v40, 0.0  ;;  %942 = vmatmul.bf16.gmra.mxu2 %v822_v41  ;;  %v512_v39 = vpack.c.bf16 %v475_v37, %v474_v30  ;;  %v397_v41 = vpop.f32.mrf.mxu3 }
 0x17c   :  { %v615_v48 = vpop.f32.mrf.mxu1  ;;  %v398_v49 = vadd.f32 %v1482_v44, %v397_v41 }
 0x17d   :  { %v498_v51 = vpack.c.bf16 %v447_v45, %v446_v43  ;;  %v616_v57 = vadd.f32 %v1505_v33, %v615_v48  ;;  %724 = vmatmul.bf16.gmra.mxu3 %v512_v39 }
 0x17e   :  { %v476_v56 = vmax.f32 %v398_v49, 0.0 }
 0x17f   :  { %654 = vmatmul.bf16.gmra.mxu1 %v498_v51  ;;  %v763_v60 = vmax.f32 %v616_v57, 0.0 }
 0x180   :  { %v327_v55 = vpop.f32.mrf.mxu0 }
 0x181   :  { %v328_v61 = vadd.f32 %v1482_v44, %v327_v55 }
 0x183   :  { %366 = vmatmul.bf16.gmra.mxu0 %v174_v53  ;;  %v448_v4 = vmax.f32 %v328_v61, 0.0  ;;  %v399_v53 = vpop.f32.mrf.mxu3 }
 0x184   :  { %v617_v58 = vpop.f32.mrf.mxu1  ;;  %v400_v57 = vadd.f32 %v1482_v44, %v399_v53 }
 0x185   :  { %v618_v59 = vadd.f32 %v1505_v33, %v617_v58 }
 0x187   :  { %v764_v62 = vmax.f32 %v618_v59, 0.0 }
 0x188   :  { %v329_v0 = vpop.f32.mrf.mxu0 }
 0x189   :  { %v330_v1 = vadd.f32 %v1482_v44, %v329_v0  ;;  %v823_v2 = vpack.c.bf16 %v764_v62, %v763_v60  ;;  %v477_v60 = vmax.f32 %v400_v57, 0.0 }
 0x18b   :  { %v449_v5 = vmax.f32 %v330_v1, 0.0  ;;  %947 = vmatmul.bf16.gmra.mxu2 %v823_v2  ;;  %v513_v61 = vpack.c.bf16 %v477_v60, %v476_v56  ;;  %v402_v63 = vpop.f32.mrf.mxu3 }
 0x18c   :  { %v620_v8 = vpop.f32.mrf.mxu1  ;;  %v403_v6 = vadd.f32 %v1482_v44, %v402_v63 }
 0x18d   :  { %v499_v11 = vpack.c.bf16 %v449_v5, %v448_v4  ;;  %v621_v17 = vadd.f32 %v1505_v33, %v620_v8  ;;  %729 = vmatmul.bf16.gmra.mxu3 %v513_v61 }
 0x18f   :  { %659 = vmatmul.bf16.gmra.mxu1 %v499_v11  ;;  %v765_v20 = vmax.f32 %v621_v17, 0.0 }
 0x190   :  { %v332_v15 = vpop.f32.mrf.mxu0 }
 0x191   :  { %v333_v21 = vadd.f32 %v1482_v44, %v332_v15 }
 0x193   :  { %371 = vmatmul.bf16.gmra.mxu0 %v175_v13  ;;  %v450_v28 = vmax.f32 %v333_v21, 0.0  ;;  %v404_v10 = vpop.f32.mrf.mxu3  ;;  %v478_v13 = vmax.f32 %v403_v6, 0.0 }
 0x194   :  { %v622_v18 = vpop.f32.mrf.mxu1  ;;  %v405_v14 = vadd.f32 %v1482_v44, %v404_v10 }
 0x195   :  { %v623_v19 = vadd.f32 %v1505_v33, %v622_v18 }
 0x196   :  { %v479_v17 = vmax.f32 %v405_v14, 0.0 }
 0x197   :  { %v766_v22 = vmax.f32 %v623_v19, 0.0 }
 0x198   :  { %v334_v24 = vpop.f32.mrf.mxu0  ;;  %v514_v18 = vpack.c.bf16 %v479_v17, %v478_v13 }
 0x199   :  { %v335_v25 = vadd.f32 %v1482_v44, %v334_v24  ;;  %v824_v26 = vpack.c.bf16 %v766_v22, %v765_v20 }
 0x19b   :  { %v451_v29 = vmax.f32 %v335_v25, 0.0  ;;  %952 = vmatmul.bf16.gmra.mxu2 %v824_v26  ;;  %v407_v20 = vpop.f32.mrf.mxu3 }
 0x19c   :  { %v625_v32 = vpop.f32.mrf.mxu1  ;;  %v408_v27 = vadd.f32 %v1482_v44, %v407_v20 }
 0x19d   :  { %v500_v36 = vpack.c.bf16 %v451_v29, %v450_v28  ;;  %v626_v42 = vadd.f32 %v1505_v33, %v625_v32  ;;  %734 = vmatmul.bf16.gmra.mxu3 %v514_v18 }
 0x19f   :  { %664 = vmatmul.bf16.gmra.mxu1 %v500_v36  ;;  %v767_v46 = vmax.f32 %v626_v42, 0.0  ;;  %v480_v36 = vmax.f32 %v408_v27, 0.0 }
 0x1a0   :  { %v337_v40 = vpop.f32.mrf.mxu0 }
 0x1a1   :  { %v338_v47 = vadd.f32 %v1482_v44, %v337_v40 }
 0x1a3   :  { %376 = vmatmul.bf16.gmra.mxu0 %v176_v38  ;;  %v452_v54 = vmax.f32 %v338_v47, 0.0  ;;  %v409_v31 = vpop.f32.mrf.mxu3 }
 0x1a4   :  { %v627_v43 = vpop.f32.mrf.mxu1  ;;  %v410_v37 = vadd.f32 %v1482_v44, %v409_v31 }
 0x1a5   :  { %v628_v45 = vadd.f32 %v1505_v33, %v627_v43 }
 0x1a6   :  { %v481_v40 = vmax.f32 %v410_v37, 0.0 }
 0x1a7   :  { %v768_v48 = vmax.f32 %v628_v45, 0.0 }
 0x1a8   :  { %v339_v50 = vpop.f32.mrf.mxu0  ;;  %v515_v43 = vpack.c.bf16 %v481_v40, %v480_v36 }
 0x1a9   :  { %v340_v51 = vadd.f32 %v1482_v44, %v339_v50  ;;  %v825_v52 = vpack.c.bf16 %v768_v48, %v767_v46 }
 0x1ab   :  { %v453_v55 = vmax.f32 %v340_v51, 0.0  ;;  %957 = vmatmul.bf16.gmra.mxu2 %v825_v52  ;;  %v412_v47 = vpop.f32.mrf.mxu3 }
 0x1ac   :  { %v630_v58 = vpop.f32.mrf.mxu1 }
 0x1ad   :  { %v501_v59 = vpack.c.bf16 %v453_v55, %v452_v54  ;;  %v631_v0 = vadd.f32 %v1505_v33, %v630_v58  ;;  %739 = vmatmul.bf16.gmra.mxu3 %v515_v43  ;;  %v413_v55 = vadd.f32 %v1482_v44, %v412_v47 }
 0x1af   :  { %669 = vmatmul.bf16.gmra.mxu1 %v501_v59  ;;  %v769_v3 = vmax.f32 %v631_v0, 0.0 }
 0x1b0   :  { %v342_v62 = vpop.f32.mrf.mxu0 }
 0x1b1   :  { %v343_v4 = vadd.f32 %v1482_v44, %v342_v62  ;;  %v482_v62 = vmax.f32 %v413_v55, 0.0 }
 0x1b3   :  { %v454_v11 = vmax.f32 %v343_v4, 0.0  ;;  %v414_v59 = vpop.f32.mrf.mxu3 }
 0x1b4   :  { %v632_v1 = vpop.f32.mrf.mxu1  ;;  %v415_v63 = vadd.f32 %v1482_v44, %v414_v59 }
 0x1b5   :  { %v633_v2 = vadd.f32 %v1505_v33, %v632_v1 }
 0x1b7   :  { %v770_v5 = vmax.f32 %v633_v2, 0.0  ;;  %v483_v2 = vmax.f32 %v415_v63, 0.0 }
 0x1b8   :  { %v344_v7 = vpop.f32.mrf.mxu0 }
 0x1b9   :  { %v345_v8 = vadd.f32 %v1482_v44, %v344_v7  ;;  %v826_v9 = vpack.c.bf16 %v770_v5, %v769_v3  ;;  %v516_v5 = vpack.c.bf16 %v483_v2, %v482_v62 }
 0x1bb   :  { %v455_v12 = vmax.f32 %v345_v8, 0.0  ;;  %962 = vmatmul.bf16.gmra.mxu2 %v826_v9  ;;  %v417_v8 = vpop.f32.mrf.mxu3 }
 0x1bc   :  { %v635_v15 = vpop.f32.mrf.mxu1 }
 0x1bd   :  { %v502_v16 = vpack.c.bf16 %v455_v12, %v454_v11  ;;  %v636_v21 = vadd.f32 %v1505_v33, %v635_v15  ;;  %744 = vmatmul.bf16.gmra.mxu3 %v516_v5 }
 0x1bf   :  { %674 = vmatmul.bf16.gmra.mxu1 %v502_v16  ;;  %v771_v24 = vmax.f32 %v636_v21, 0.0  ;;  %v418_v16 = vadd.f32 %v1482_v44, %v417_v8 }
 0x1c0   :  { %v347_v19 = vpop.f32.mrf.mxu0 }
 0x1c1   :  { %v348_v25 = vadd.f32 %v1482_v44, %v347_v19 }
 0x1c3   :  { %v456_v32 = vmax.f32 %v348_v25, 0.0  ;;  %v419_v20 = vpop.f32.mrf.mxu3 }
 0x1c4   :  { %v637_v22 = vpop.f32.mrf.mxu1 }
 0x1c5   :  { %v638_v23 = vadd.f32 %v1505_v33, %v637_v22 }
 0x1c7   :  { %v772_v26 = vmax.f32 %v638_v23, 0.0  ;;  %v484_v23 = vmax.f32 %v418_v16, 0.0 }
 0x1c8   :  { %v349_v28 = vpop.f32.mrf.mxu0 }
 0x1c9   :  { %v350_v29 = vadd.f32 %v1482_v44, %v349_v28  ;;  %v827_v30 = vpack.c.bf16 %v772_v26, %v771_v24  ;;  %v420_v24 = vadd.f32 %v1482_v44, %v419_v20 }
 0x1cb   :  { %v457_v34 = vmax.f32 %v350_v29, 0.0  ;;  %967 = vmatmul.bf16.gmra.mxu2 %v827_v30  ;;  %v485_v27 = vmax.f32 %v420_v24, 0.0 }
 0x1cc   :  { %v640_v38 = vpop.f32.mrf.mxu1 }
 0x1cd   :  { %v503_v39 = vpack.c.bf16 %v457_v34, %v456_v32  ;;  %v641_v46 = vadd.f32 %v1505_v33, %v640_v38  ;;  %v517_v30 = vpack.c.bf16 %v485_v27, %v484_v23 }
 0x1ce   :  { %v928_v41 = vpop.f32.mrf.mxu2 }
 0x1cf   :  { %v929_v42 = vadd.f32 %v1557_v35, %v928_v41  ;;  %679 = vmatmul.bf16.gmra.mxu1 %v503_v39  ;;  %v773_v50 = vmax.f32 %v641_v46, 0.0  ;;  %749 = vmatmul.bf16.gmra.mxu3 %v517_v30 }
 0x1d0   :  { %v352_v45 = vpop.f32.mrf.mxu0 }
 0x1d1   :  { %1089 = vst.msk [vmem:[%s1944_s7] sm:$0xff] %vm1088_vm0, %v929_v42  ;;  %v353_v52 = vadd.f32 %v1482_v44, %v352_v45 }
 0x1d3   :  { %v458_v60 = vmax.f32 %v353_v52, 0.0 }
 0x1d4   :  { %v642_v48 = vpop.f32.mrf.mxu1 }
 0x1d5   :  { %v643_v49 = vadd.f32 %v1505_v33, %v642_v48 }
 0x1d6   :  { %v930_v51 = vpop.f32.mrf.mxu2  ;;  %v715_v55 = vpop.f32.mrf.mxu3 }
 0x1d7   :  { %v774_v53 = vmax.f32 %v643_v49, 0.0  ;;  %v931_v54 = vadd.f32 %v1557_v35, %v930_v51 }
 0x1d8   :  { %v354_v56 = vpop.f32.mrf.mxu0 }
 0x1d9   :  { %1090 = vst.msk [vmem:[%s1944_s7 + $0x8] sm:$0xff] %vm1088_vm0, %v931_v54  ;;  %v355_v57 = vadd.f32 %v1482_v44, %v354_v56  ;;  %v828_v58 = vpack.c.bf16 %v774_v53, %v773_v50 }
 0x1db   :  { %v459_v61 = vmax.f32 %v355_v57, 0.0  ;;  %972 = vmatmul.bf16.gmra.mxu2 %v828_v58 }
 0x1dc   :  { %v645_v0 = vpop.f32.mrf.mxu1 }
 0x1dd   :  { %v504_v1 = vpack.c.bf16 %v459_v61, %v458_v60  ;;  %v646_v7 = vadd.f32 %v1505_v33, %v645_v0 }
 0x1de   :  { %v933_v3 = vpop.f32.mrf.mxu2  ;;  %v717_v5 = vpop.f32.mrf.mxu3 }
 0x1df   :  { %v934_v4 = vadd.f32 %v1557_v35, %v933_v3  ;;  %684 = vmatmul.bf16.gmra.mxu1 %v504_v1  ;;  %v775_v11 = vmax.f32 %v646_v7, 0.0  ;;  %v716_v1 = vadd.f32 %v1505_v33, %v715_v55  ;;  %v718_v8 = vadd.f32 %v1505_v33, %v717_v5 }
 0x1e0   :  { %v357_v6 = vpop.f32.mrf.mxu0 }
 0x1e1   :  { %1091 = vst.msk [vmem:[%s1944_s7 + $0x10] sm:$0xff] %vm1088_vm0, %v934_v4  ;;  %v358_v13 = vadd.f32 %v1482_v44, %v357_v6  ;;  %v803_v7 = vmax.f32 %v716_v1, 0.0 }
 0x1e3   :  { %v460_v21 = vmax.f32 %v358_v13, 0.0 }
 0x1e4   :  { %v647_v9 = vpop.f32.mrf.mxu1 }
 0x1e5   :  { %v648_v10 = vadd.f32 %v1505_v33, %v647_v9 }
 0x1e6   :  { %v935_v12 = vpop.f32.mrf.mxu2 }
 0x1e7   :  { %v776_v14 = vmax.f32 %v648_v10, 0.0  ;;  %v936_v15 = vadd.f32 %v1557_v35, %v935_v12 }
 0x1e8   :  { %v359_v17 = vpop.f32.mrf.mxu0 }
 0x1e9   :  { %1092 = vst.msk [vmem:[%s1944_s7 + $0x18] sm:$0xff] %vm1088_vm0, %v936_v15  ;;  %v360_v18 = vadd.f32 %v1482_v44, %v359_v17  ;;  %v829_v19 = vpack.c.bf16 %v776_v14, %v775_v11  ;;  %v804_v11 = vmax.f32 %v718_v8, 0.0 }
 0x1ea   :  { %v720_v16 = vpop.f32.mrf.mxu3 }
 0x1eb   :  { %v461_v22 = vmax.f32 %v360_v18, 0.0  ;;  %977 = vmatmul.bf16.gmra.mxu2 %v829_v19  ;;  %v843_v13 = vpack.c.bf16 %v804_v11, %v803_v7  ;;  %v721_v27 = vadd.f32 %v1505_v33, %v720_v16 }
 0x1ec   :  { %v650_v25 = vpop.f32.mrf.mxu1 }
 0x1ed   :  { %v505_v26 = vpack.c.bf16 %v461_v22, %v460_v21  ;;  %v651_v32 = vadd.f32 %v1505_v33, %v650_v25  ;;  %1047 = vmatmul.bf16.vlgmr.msra.gmra.mxu3 %v843_v13  ;;  %v1315_v25 = vld [vmem:[%s1939_s2] ss:$0 sm:$0xff] }
 0x1ee   :  { %v938_v28 = vpop.f32.mrf.mxu2 }
 0x1ef   :  { %v939_v29 = vadd.f32 %v1557_v35, %v938_v28  ;;  %689 = vmatmul.bf16.gmra.mxu1 %v505_v26  ;;  %v777_v38 = vmax.f32 %v651_v32, 0.0  ;;  %v805_v32 = vmax.f32 %v721_v27, 0.0 }
 0x1f0   :  { %v362_v31 = vpop.f32.mrf.mxu0 }
 0x1f1   :  { %1093 = vst.msk [vmem:[%s1944_s7 + $0x20] sm:$0xff] %vm1088_vm0, %v939_v29  ;;  %v363_v39 = vadd.f32 %v1482_v44, %v362_v31 }
 0x1f2   :  { %v722_v30 = vpop.f32.mrf.mxu3 }
 0x1f3   :  { %v462_v46 = vmax.f32 %v363_v39, 0.0 }
 0x1f4   :  { %v652_v34 = vpop.f32.mrf.mxu1 }
 0x1f5   :  { %v653_v36 = vadd.f32 %v1505_v33, %v652_v34  ;;  %v723_v34 = vadd.f32 %v1505_v33, %v722_v30 }
 0x1f6   :  { %v940_v37 = vpop.f32.mrf.mxu2 }
 0x1f7   :  { %v778_v40 = vmax.f32 %v653_v36, 0.0  ;;  %v941_v41 = vadd.f32 %v1557_v35, %v940_v37 }
 0x1f8   :  { %v364_v42 = vpop.f32.mrf.mxu0 }
 0x1f9   :  { %1094 = vst.msk [vmem:[%s1944_s7 + $0x28] sm:$0xff] %vm1088_vm0, %v941_v41  ;;  %v365_v43 = vadd.f32 %v1482_v44, %v364_v42  ;;  %v830_v45 = vpack.c.bf16 %v778_v40, %v777_v38  ;;  %v806_v38 = vmax.f32 %v723_v34, 0.0 }
 0x1fb   :  { %v463_v47 = vmax.f32 %v365_v43, 0.0  ;;  %982 = vmatmul.bf16.gmra.mxu2 %v830_v45  ;;  %v844_v40 = vpack.c.bf16 %v806_v38, %v805_v32 }
 0x1fc   :  { %v655_v48 = vpop.f32.mrf.mxu1 }
 0x1fd   :  { %v506_v49 = vpack.c.bf16 %v463_v47, %v462_v46  ;;  %v656_v53 = vadd.f32 %v1505_v33, %v655_v48  ;;  %1052 = vmatmul.bf16.gmra.mxu3 %v844_v40 }
 0x1fe   :  { %v943_v50 = vpop.f32.mrf.mxu2 }
 0x1ff   :  { %v944_v51 = vadd.f32 %v1557_v35, %v943_v50  ;;  %694 = vmatmul.bf16.gmra.mxu1 %v506_v49  ;;  %v779_v58 = vmax.f32 %v656_v53, 0.0 }
 0x200   :  { %v367_v52 = vpop.f32.mrf.mxu0  ;;  %v725_v43 = vpop.f32.mrf.mxu3 }
 0x201   :  { %1095 = vst.msk [vmem:[%s1944_s7 + $0x30] sm:$0xff] %vm1088_vm0, %v944_v51  ;;  %v368_v59 = vadd.f32 %v1482_v44, %v367_v52 }
 0x203   :  { %v464_v2 = vmax.f32 %v368_v59, 0.0 }
 0x204   :  { %v657_v54 = vpop.f32.mrf.mxu1 }
 0x205   :  { %v658_v56 = vadd.f32 %v1505_v33, %v657_v54  ;;  %v726_v54 = vadd.f32 %v1505_v33, %v725_v43 }
 0x206   :  { %v945_v57 = vpop.f32.mrf.mxu2 }
 0x207   :  { %v780_v60 = vmax.f32 %v658_v56, 0.0  ;;  %v946_v61 = vadd.f32 %v1557_v35, %v945_v57 }
 0x208   :  { %v369_v62 = vpop.f32.mrf.mxu0 }
 0x209   :  { %v831_v63 = vpack.c.bf16 %v780_v60, %v779_v58  ;;  %1096 = vst.msk [vmem:[%s1944_s7 + $0x38] sm:$0xff] %vm1088_vm0, %v946_v61  ;;  %v370_v0 = vadd.f32 %v1482_v44, %v369_v62  ;;  %v727_v58 = vpop.f32.mrf.mxu3  ;;  %v807_v60 = vmax.f32 %v726_v54, 0.0 }
 0x20a   :  { %v728_v61 = vadd.f32 %v1505_v33, %v727_v58 }
 0x20b   :  { %v465_v3 = vmax.f32 %v370_v0, 0.0  ;;  %987 = vmatmul.bf16.gmra.mxu2 %v831_v63 }
 0x20c   :  { %v660_v4 = vpop.f32.mrf.mxu1  ;;  %v808_v0 = vmax.f32 %v728_v61, 0.0 }
 0x20d   :  { %v507_v6 = vpack.c.bf16 %v465_v3, %v464_v2  ;;  %v661_v14 = vadd.f32 %v1505_v33, %v660_v4 }
 0x20e   :  { %v948_v9 = vpop.f32.mrf.mxu2  ;;  %v845_v1 = vpack.c.bf16 %v808_v0, %v807_v60 }
 0x20f   :  { %v949_v10 = vadd.f32 %v1557_v35, %v948_v9  ;;  %699 = vmatmul.bf16.gmra.mxu1 %v507_v6  ;;  %v781_v19 = vmax.f32 %v661_v14, 0.0 }
 0x210   :  { %v372_v12 = vpop.f32.mrf.mxu0  ;;  %1057 = vmatmul.bf16.gmra.mxu3 %v845_v1 }
 0x211   :  { %1097 = vst.msk [vmem:[%s1944_s7 + $0x40] sm:$0xff] %vm1088_vm0, %v949_v10  ;;  %v373_v20 = vadd.f32 %v1482_v44, %v372_v12  ;;  %v730_v4 = vpop.f32.mrf.mxu3 }
 0x212   :  { %v731_v11 = vadd.f32 %v1505_v33, %v730_v4 }
 0x213   :  { %v466_v28 = vmax.f32 %v373_v20, 0.0 }
 0x214   :  { %v662_v15 = vpop.f32.mrf.mxu1  ;;  %v809_v14 = vmax.f32 %v731_v11, 0.0 }
 0x215   :  { %v663_v17 = vadd.f32 %v1505_v33, %v662_v15 }
 0x216   :  { %v950_v18 = vpop.f32.mrf.mxu2 }
 0x217   :  { %v782_v21 = vmax.f32 %v663_v17, 0.0  ;;  %v951_v22 = vadd.f32 %v1557_v35, %v950_v18 }
 0x218   :  { %v374_v23 = vpop.f32.mrf.mxu0 }
 0x219   :  { %v832_v24 = vpack.c.bf16 %v782_v21, %v781_v19  ;;  %1098 = vst.msk [vmem:[%s1944_s7 + $0x48] sm:$0xff] %vm1088_vm0, %v951_v22  ;;  %v375_v26 = vadd.f32 %v1315_v25, %v374_v23  ;;  %v732_v13 = vpop.f32.mrf.mxu3 }
 0x21a   :  { %v733_v15 = vadd.f32 %v1505_v33, %v732_v13 }
 0x21b   :  { %v467_v29 = vmax.f32 %v375_v26, 0.0  ;;  %992 = vmatmul.bf16.gmra.mxu2 %v832_v24 }
 0x21c   :  { %v665_v44 = vpop.f32.mrf.mxu1  ;;  %v810_v18 = vmax.f32 %v733_v15, 0.0 }
 0x21d   :  { %v508_v31 = vpack.c.bf16 %v467_v29, %v466_v28  ;;  %v666_v41 = vadd.f32 %v1505_v33, %v665_v44 }
 0x21e   :  { %v953_v36 = vpop.f32.mrf.mxu2  ;;  %v846_v19 = vpack.c.bf16 %v810_v18, %v809_v14 }
 0x21f   :  { %v954_v37 = vadd.f32 %v1557_v35, %v953_v36  ;;  %704 = vmatmul.bf16.gmra.mxu1 %v508_v31  ;;  %v783_v47 = vmax.f32 %v666_v41, 0.0 }
 0x220   :  { %v377_v39 = vpop.f32.mrf.mxu0  ;;  %1062 = vmatmul.bf16.gmra.mxu3 %v846_v19 }
 0x221   :  { %1099 = vst.msk [vmem:[%s1944_s7 + $0x50] sm:$0xff] %vm1088_vm0, %v954_v37  ;;  %v378_v48 = vadd.f32 %v1315_v25, %v377_v39  ;;  %v735_v22 = vpop.f32.mrf.mxu3 }
 0x222   :  { %v736_v29 = vadd.f32 %v1505_v33, %v735_v22 }
 0x223   :  { %v468_v55 = vmax.f32 %v378_v48, 0.0 }
 0x224   :  { %v667_v42 = vpop.f32.mrf.mxu1  ;;  %v811_v31 = vmax.f32 %v736_v29, 0.0 }
 0x225   :  { %v668_v45 = vadd.f32 %v1505_v33, %v667_v42 }
 0x226   :  { %v955_v46 = vpop.f32.mrf.mxu2 }
 0x227   :  { %v784_v49 = vmax.f32 %v668_v45, 0.0  ;;  %v956_v50 = vadd.f32 %v1557_v35, %v955_v46 }
 0x228   :  { %v379_v51 = vpop.f32.mrf.mxu0 }
 0x229   :  { %v833_v52 = vpack.c.bf16 %v784_v49, %v783_v47  ;;  %1100 = vst.msk [vmem:[%s1944_s7 + $0x58] sm:$0xff] %vm1088_vm0, %v956_v50  ;;  %v380_v53 = vadd.f32 %v1315_v25, %v379_v51  ;;  %v737_v30 = vpop.f32.mrf.mxu3 }
 0x22a   :  { %v738_v32 = vadd.f32 %v1505_v33, %v737_v30 }
 0x22b   :  { %v469_v56 = vmax.f32 %v380_v53, 0.0  ;;  %997 = vmatmul.bf16.gmra.mxu2 %v833_v52 }
 0x22c   :  { %v670_v57 = vpop.f32.mrf.mxu1  ;;  %v812_v37 = vmax.f32 %v738_v32, 0.0 }
 0x22d   :  { %v509_v59 = vpack.c.bf16 %v469_v56, %v468_v55  ;;  %v671_v2 = vadd.f32 %v1505_v33, %v670_v57 }
 0x22e   :  { %v958_v62 = vpop.f32.mrf.mxu2  ;;  %v847_v38 = vpack.c.bf16 %v812_v37, %v811_v31 }
 0x22f   :  { %v959_v63 = vadd.f32 %v1557_v35, %v958_v62  ;;  %709 = vmatmul.bf16.gmra.mxu1 %v509_v59  ;;  %v785_v7 = vmax.f32 %v671_v2, 0.0 }
 0x230   :  { %1067 = vmatmul.bf16.gmra.mxu3 %v847_v38 }
 0x231   :  { %1101 = vst.msk [vmem:[%s1944_s7 + $0x60] sm:$0xff] %vm1088_vm0, %v959_v63  ;;  %v740_v41 = vpop.f32.mrf.mxu3 }
 0x232   :  { %v741_v49 = vadd.f32 %v1505_v33, %v740_v41 }
 0x234   :  { %v672_v3 = vpop.f32.mrf.mxu1  ;;  %v813_v52 = vmax.f32 %v741_v49, 0.0 }
 0x235   :  { %v673_v5 = vadd.f32 %v1505_v33, %v672_v3 }
 0x236   :  { %v960_v6 = vpop.f32.mrf.mxu2 }
 0x237   :  { %v786_v8 = vmax.f32 %v673_v5, 0.0  ;;  %v961_v9 = vadd.f32 %v1557_v35, %v960_v6 }
 0x239   :  { %v834_v10 = vpack.c.bf16 %v786_v8, %v785_v7  ;;  %1102 = vst.msk [vmem:[%s1944_s7 + $0x68] sm:$0xff] %vm1088_vm0, %v961_v9  ;;  %v742_v51 = vpop.f32.mrf.mxu3 }
 0x23a   :  { %v743_v53 = vadd.f32 %v1505_v33, %v742_v51 }
 0x23b   :  { %1002 = vmatmul.bf16.gmra.mxu2 %v834_v10 }
 0x23c   :  { %v675_v12 = vpop.f32.mrf.mxu1  ;;  %v814_v56 = vmax.f32 %v743_v53, 0.0 }
 0x23d   :  { %v676_v20 = vadd.f32 %v1505_v33, %v675_v12 }
 0x23e   :  { %v963_v16 = vpop.f32.mrf.mxu2  ;;  %v848_v57 = vpack.c.bf16 %v814_v56, %v813_v52 }
 0x23f   :  { %v964_v17 = vadd.f32 %v1557_v35, %v963_v16  ;;  %v787_v25 = vmax.f32 %v676_v20, 0.0 }
 0x240   :  { %1072 = vmatmul.bf16.gmra.mxu3 %v848_v57 }
 0x241   :  { %1103 = vst.msk [vmem:[%s1944_s7 + $0x70] sm:$0xff] %vm1088_vm0, %v964_v17  ;;  %v745_v60 = vpop.f32.mrf.mxu3 }
 0x242   :  { %v746_v3 = vadd.f32 %v1505_v33, %v745_v60 }
 0x244   :  { %v677_v21 = vpop.f32.mrf.mxu1  ;;  %v815_v6 = vmax.f32 %v746_v3, 0.0 }
 0x245   :  { %v678_v23 = vadd.f32 %v1505_v33, %v677_v21 }
 0x246   :  { %v965_v24 = vpop.f32.mrf.mxu2 }
 0x247   :  { %v788_v26 = vmax.f32 %v678_v23, 0.0  ;;  %v966_v27 = vadd.f32 %v1557_v35, %v965_v24 }
 0x249   :  { %v835_v28 = vpack.c.bf16 %v788_v26, %v787_v25  ;;  %1104 = vst.msk [vmem:[%s1944_s7 + $0x78] sm:$0xff] %vm1088_vm0, %v966_v27  ;;  %v747_v5 = vpop.f32.mrf.mxu3 }
 0x24a   :  { %v748_v7 = vadd.f32 %v1505_v33, %v747_v5 }
 0x24b   :  { %1007 = vmatmul.bf16.gmra.mxu2 %v835_v28 }
 0x24c   :  { %v680_v44 = vpop.f32.mrf.mxu1  ;;  %v816_v10 = vmax.f32 %v748_v7, 0.0 }
 0x24d   :  { %v681_v39 = vadd.f32 %v1505_v33, %v680_v44  ;;  %v1316_v44 = vld [vmem:[%s1941_s4] ss:$0 sm:$0xff] }
 0x24e   :  { %v968_v34 = vpop.f32.mrf.mxu2  ;;  %v849_v11 = vpack.c.bf16 %v816_v10, %v815_v6 }
 0x24f   :  { %v969_v36 = vadd.f32 %v1557_v35, %v968_v34  ;;  %v789_v45 = vmax.f32 %v681_v39, 0.0 }
 0x250   :  { %1077 = vmatmul.bf16.gmra.mxu3 %v849_v11 }
 0x251   :  { %1105 = vst.msk [vmem:[%s1944_s7 + $0x80] sm:$0xff] %vm1088_vm0, %v969_v36 }
 0x252   :  { %v750_v14 = vpop.f32.mrf.mxu3 }
 0x253   :  { %v751_v21 = vadd.f32 %v1505_v33, %v750_v14 }
 0x254   :  { %v682_v40 = vpop.f32.mrf.mxu1 }
 0x255   :  { %v683_v42 = vadd.f32 %v1505_v33, %v682_v40  ;;  %v817_v24 = vmax.f32 %v751_v21, 0.0 }
 0x256   :  { %v970_v43 = vpop.f32.mrf.mxu2 }
 0x257   :  { %v790_v46 = vmax.f32 %v683_v42, 0.0  ;;  %v971_v47 = vadd.f32 %v1557_v35, %v970_v43 }
 0x259   :  { %v836_v48 = vpack.c.bf16 %v790_v46, %v789_v45  ;;  %1106 = vst.msk [vmem:[%s1944_s7 + $0x88] sm:$0xff] %vm1088_vm0, %v971_v47 }
 0x25a   :  { %v752_v23 = vpop.f32.mrf.mxu3 }
 0x25b   :  { %1012 = vmatmul.bf16.gmra.mxu2 %v836_v48  ;;  %v753_v25 = vadd.f32 %v1505_v33, %v752_v23 }
 0x25c   :  { %v685_v50 = vpop.f32.mrf.mxu1 }
 0x25d   :  { %v686_v58 = vadd.f32 %v1505_v33, %v685_v50  ;;  %v818_v28 = vmax.f32 %v753_v25, 0.0 }
 0x25e   :  { %v973_v54 = vpop.f32.mrf.mxu2 }
 0x25f   :  { %v974_v55 = vadd.f32 %v1557_v35, %v973_v54  ;;  %v791_v63 = vmax.f32 %v686_v58, 0.0  ;;  %v850_v29 = vpack.c.bf16 %v818_v28, %v817_v24 }
 0x261   :  { %1107 = vst.msk [vmem:[%s1944_s7 + $0x90] sm:$0xff] %vm1088_vm0, %v974_v55  ;;  %1082 = vmatmul.bf16.gmra.mxu3 %v850_v29 }
 0x264   :  { %v687_v59 = vpop.f32.mrf.mxu1 }
 0x265   :  { %v688_v61 = vadd.f32 %v1505_v33, %v687_v59 }
 0x266   :  { %v975_v62 = vpop.f32.mrf.mxu2 }
 0x267   :  { %v792_v0 = vmax.f32 %v688_v61, 0.0  ;;  %v976_v1 = vadd.f32 %v1557_v35, %v975_v62 }
 0x269   :  { %v837_v2 = vpack.c.bf16 %v792_v0, %v791_v63  ;;  %1108 = vst.msk [vmem:[%s1944_s7 + $0x98] sm:$0xff] %vm1088_vm0, %v976_v1 }
 0x26b   :  { %1017 = vmatmul.bf16.gmra.mxu2 %v837_v2 }
 0x26c   :  { %v690_v4 = vpop.f32.mrf.mxu1 }
 0x26d   :  { %v691_v12 = vadd.f32 %v1505_v33, %v690_v4 }
 0x26e   :  { %v978_v8 = vpop.f32.mrf.mxu2 }
 0x26f   :  { %v979_v9 = vadd.f32 %v1557_v35, %v978_v8  ;;  %v793_v17 = vmax.f32 %v691_v12, 0.0 }
 0x270   :  { %v1048_v47 = vpop.f32.mrf.mxu3 }
 0x271   :  { %1109 = vst.msk [vmem:[%s1944_s7 + $0xa0] sm:$0xff] %vm1088_vm0, %v979_v9  ;;  %v1049_v52 = vadd.f32 %v1557_v35, %v1048_v47 }
 0x273   :  { %1137 = vst.msk [vmem:[%s1944_s7 + $0x180] sm:$0xff] %vm1088_vm0, %v1049_v52 }
 0x274   :  { %v692_v13 = vpop.f32.mrf.mxu1 }
 0x275   :  { %v693_v15 = vadd.f32 %v1505_v33, %v692_v13 }
 0x276   :  { %v980_v16 = vpop.f32.mrf.mxu2 }
 0x277   :  { %v794_v18 = vmax.f32 %v693_v15, 0.0  ;;  %v981_v19 = vadd.f32 %v1557_v35, %v980_v16 }
 0x278   :  { %v1050_v55 = vpop.f32.mrf.mxu3 }
 0x279   :  { %v838_v20 = vpack.c.bf16 %v794_v18, %v793_v17  ;;  %1110 = vst.msk [vmem:[%s1944_s7 + $0xa8] sm:$0xff] %vm1088_vm0, %v981_v19  ;;  %v1051_v57 = vadd.f32 %v1557_v35, %v1050_v55 }
 0x27b   :  { %1022 = vmatmul.bf16.gmra.mxu2 %v838_v20  ;;  %1138 = vst.msk [vmem:[%s1944_s7 + $0x188] sm:$0xff] %vm1088_vm0, %v1051_v57 }
 0x27c   :  { %v695_v22 = vpop.f32.mrf.mxu1 }
 0x27d   :  { %v696_v30 = vadd.f32 %v1316_v44, %v695_v22 }
 0x27e   :  { %v983_v26 = vpop.f32.mrf.mxu2 }
 0x27f   :  { %v984_v27 = vadd.f32 %v1557_v35, %v983_v26  ;;  %v795_v33 = vmax.f32 %v696_v30, 0.0 }
 0x280   :  { %v1053_v62 = vpop.f32.mrf.mxu3 }
 0x281   :  { %1111 = vst.msk [vmem:[%s1944_s7 + $0xb0] sm:$0xff] %vm1088_vm0, %v984_v27  ;;  %v1054_v3 = vadd.f32 %v1557_v35, %v1053_v62 }
 0x283   :  { %1139 = vst.msk [vmem:[%s1944_s7 + $0x190] sm:$0xff] %vm1088_vm0, %v1054_v3 }
 0x284   :  { %v697_v31 = vpop.f32.mrf.mxu1 }
 0x285   :  { %v698_v32 = vadd.f32 %v1316_v44, %v697_v31 }
 0x286   :  { %v985_v34 = vpop.f32.mrf.mxu2 }
 0x287   :  { %v796_v36 = vmax.f32 %v698_v32, 0.0  ;;  %v986_v37 = vadd.f32 %v1557_v35, %v985_v34 }
 0x288   :  { %v1055_v6 = vpop.f32.mrf.mxu3 }
 0x289   :  { %v839_v38 = vpack.c.bf16 %v796_v36, %v795_v33  ;;  %1112 = vst.msk [vmem:[%s1944_s7 + $0xb8] sm:$0xff] %vm1088_vm0, %v986_v37  ;;  %v1056_v8 = vadd.f32 %v1557_v35, %v1055_v6 }
 0x28b   :  { %1027 = vmatmul.bf16.gmra.mxu2 %v839_v38  ;;  %1140 = vst.msk [vmem:[%s1944_s7 + $0x198] sm:$0xff] %vm1088_vm0, %v1056_v8 }
 0x28c   :  { %v700_v39 = vpop.f32.mrf.mxu1 }
 0x28d   :  { %v701_v42 = vadd.f32 %v1316_v44, %v700_v39 }
 0x28e   :  { %v988_v40 = vpop.f32.mrf.mxu2 }
 0x28f   :  { %v989_v41 = vadd.f32 %v1557_v35, %v988_v40  ;;  %v797_v48 = vmax.f32 %v701_v42, 0.0 }
 0x291   :  { %1113 = vst.msk [vmem:[%s1944_s7 + $0xc0] sm:$0xff] %vm1088_vm0, %v989_v41 }
 0x293   :  { %v1058_v13 = vpop.f32.mrf.mxu3 }
 0x294   :  { %v702_v43 = vpop.f32.mrf.mxu1  ;;  %v1059_v18 = vadd.f32 %v1557_v35, %v1058_v13 }
 0x295   :  { %v703_v45 = vadd.f32 %v1316_v44, %v702_v43 }
 0x296   :  { %v990_v46 = vpop.f32.mrf.mxu2  ;;  %1141 = vst.msk [vmem:[%s1944_s7 + $0x1a0] sm:$0xff] %vm1088_vm0, %v1059_v18 }
 0x297   :  { %v798_v49 = vmax.f32 %v703_v45, 0.0  ;;  %v991_v50 = vadd.f32 %v1557_v35, %v990_v46 }
 0x299   :  { %v840_v51 = vpack.c.bf16 %v798_v49, %v797_v48  ;;  %1114 = vst.msk [vmem:[%s1944_s7 + $0xc8] sm:$0xff] %vm1088_vm0, %v991_v50 }
 0x29b   :  { %1032 = vmatmul.bf16.gmra.mxu2 %v840_v51  ;;  %v1060_v20 = vpop.f32.mrf.mxu3 }
 0x29c   :  { %v705_v53 = vpop.f32.mrf.mxu1  ;;  %v1061_v22 = vadd.f32 %v1557_v35, %v1060_v20 }
 0x29d   :  { %v706_v58 = vadd.f32 %v1316_v44, %v705_v53 }
 0x29e   :  { %v993_v54 = vpop.f32.mrf.mxu2  ;;  %1142 = vst.msk [vmem:[%s1944_s7 + $0x1a8] sm:$0xff] %vm1088_vm0, %v1061_v22 }
 0x29f   :  { %v994_v56 = vadd.f32 %v1557_v35, %v993_v54  ;;  %v799_v63 = vmax.f32 %v706_v58, 0.0 }
 0x2a1   :  { %1115 = vst.msk [vmem:[%s1944_s7 + $0xd0] sm:$0xff] %vm1088_vm0, %v994_v56 }
 0x2a3   :  { %v1063_v24 = vpop.f32.mrf.mxu3 }
 0x2a4   :  { %v707_v59 = vpop.f32.mrf.mxu1  ;;  %v1064_v26 = vadd.f32 %v1557_v35, %v1063_v24 }
 0x2a5   :  { %v708_v60 = vadd.f32 %v1316_v44, %v707_v59 }
 0x2a6   :  { %v995_v61 = vpop.f32.mrf.mxu2  ;;  %1143 = vst.msk [vmem:[%s1944_s7 + $0x1b0] sm:$0xff] %vm1088_vm0, %v1064_v26 }
 0x2a7   :  { %v800_v0 = vmax.f32 %v708_v60, 0.0  ;;  %v996_v1 = vadd.f32 %v1557_v35, %v995_v61 }
 0x2a9   :  { %v841_v2 = vpack.c.bf16 %v800_v0, %v799_v63  ;;  %1116 = vst.msk [vmem:[%s1944_s7 + $0xd8] sm:$0xff] %vm1088_vm0, %v996_v1 }
 0x2ab   :  { %1037 = vmatmul.bf16.gmra.mxu2 %v841_v2  ;;  %v1065_v28 = vpop.f32.mrf.mxu3 }
 0x2ac   :  { %v710_v4 = vpop.f32.mrf.mxu1 }
 0x2ad   :  { %v711_v9 = vadd.f32 %v1316_v44, %v710_v4 }
 0x2ae   :  { %v998_v5 = vpop.f32.mrf.mxu2 }
 0x2af   :  { %v999_v7 = vadd.f32 %v1557_v35, %v998_v5  ;;  %v801_v14 = vmax.f32 %v711_v9, 0.0 }
 0x2b1   :  { %1117 = vst.msk [vmem:[%s1944_s7 + $0xe0] sm:$0xff] %vm1088_vm0, %v999_v7 }
 0x2b3   :  { %v1068_v31 = vpop.f32.mrf.mxu3 }
 0x2b4   :  { %v712_v10 = vpop.f32.mrf.mxu1  ;;  %v1069_v34 = vadd.f32 %v1557_v35, %v1068_v31 }
 0x2b5   :  { %v713_v11 = vadd.f32 %v1316_v44, %v712_v10  ;;  %v1066_v44 = vadd.f32 %v1557_v35, %v1065_v28 }
 0x2b6   :  { %v1000_v12 = vpop.f32.mrf.mxu2  ;;  %1145 = vst.msk [vmem:[%s1944_s7 + $0x1c0] sm:$0xff] %vm1088_vm0, %v1069_v34 }
 0x2b7   :  { %v802_v15 = vmax.f32 %v713_v11, 0.0  ;;  %v1001_v16 = vadd.f32 %v1557_v35, %v1000_v12  ;;  %1144 = vst.msk [vmem:[%s1944_s7 + $0x1b8] sm:$0xff] %vm1088_vm0, %v1066_v44 }
 0x2b9   :  { %v842_v17 = vpack.c.bf16 %v802_v15, %v801_v14  ;;  %1118 = vst.msk [vmem:[%s1944_s7 + $0xe8] sm:$0xff] %vm1088_vm0, %v1001_v16 }
 0x2bb   :  { %1042 = vmatmul.bf16.gmra.mxu2 %v842_v17  ;;  %v1070_v36 = vpop.f32.mrf.mxu3 }
 0x2bc   :  { %v1071_v38 = vadd.f32 %v1557_v35, %v1070_v36 }
 0x2be   :  { %v1003_v19 = vpop.f32.mrf.mxu2  ;;  %1146 = vst.msk [vmem:[%s1944_s7 + $0x1c8] sm:$0xff] %vm1088_vm0, %v1071_v38 }
 0x2bf   :  { %v1004_v21 = vadd.f32 %v1557_v35, %v1003_v19 }
 0x2c1   :  { %1119 = vst.msk [vmem:[%s1944_s7 + $0xf0] sm:$0xff] %vm1088_vm0, %v1004_v21 }
 0x2c3   :  { %v1073_v40 = vpop.f32.mrf.mxu3 }
 0x2c4   :  { %v1074_v42 = vadd.f32 %v1557_v35, %v1073_v40 }
 0x2c6   :  { %v1005_v23 = vpop.f32.mrf.mxu2  ;;  %1147 = vst.msk [vmem:[%s1944_s7 + $0x1d0] sm:$0xff] %vm1088_vm0, %v1074_v42 }
 0x2c7   :  { %v1006_v25 = vadd.f32 %v1557_v35, %v1005_v23 }
 0x2c9   :  { %1120 = vst.msk [vmem:[%s1944_s7 + $0xf8] sm:$0xff] %vm1088_vm0, %v1006_v25 }
 0x2cb   :  { %v1075_v45 = vpop.f32.mrf.mxu3 }
 0x2cc   :  { %v1076_v47 = vadd.f32 %v1557_v35, %v1075_v45 }
 0x2ce   :  { %v1008_v27 = vpop.f32.mrf.mxu2  ;;  %1148 = vst.msk [vmem:[%s1944_s7 + $0x1d8] sm:$0xff] %vm1088_vm0, %v1076_v47 }
 0x2cf   :  { %v1009_v29 = vadd.f32 %v1557_v35, %v1008_v27 }
 0x2d1   :  { %1121 = vst.msk [vmem:[%s1944_s7 + $0x100] sm:$0xff] %vm1088_vm0, %v1009_v29 }
 0x2d3   :  { %v1078_v49 = vpop.f32.mrf.mxu3 }
 0x2d4   :  { %v1079_v51 = vadd.f32 %v1557_v35, %v1078_v49 }
 0x2d6   :  { %v1010_v30 = vpop.f32.mrf.mxu2  ;;  %1149 = vst.msk [vmem:[%s1944_s7 + $0x1e0] sm:$0xff] %vm1088_vm0, %v1079_v51 }
 0x2d7   :  { %v1011_v32 = vadd.f32 %v1557_v35, %v1010_v30 }
 0x2d9   :  { %1122 = vst.msk [vmem:[%s1944_s7 + $0x108] sm:$0xff] %vm1088_vm0, %v1011_v32 }
 0x2db   :  { %v1080_v53 = vpop.f32.mrf.mxu3 }
 0x2dc   :  { %v1081_v55 = vadd.f32 %v1557_v35, %v1080_v53 }
 0x2de   :  { %v1013_v33 = vpop.f32.mrf.mxu2  ;;  %1150 = vst.msk [vmem:[%s1944_s7 + $0x1e8] sm:$0xff] %vm1088_vm0, %v1081_v55 }
 0x2df   :  { %v1014_v37 = vadd.f32 %v1557_v35, %v1013_v33 }
 0x2e1   :  { %1123 = vst.msk [vmem:[%s1944_s7 + $0x110] sm:$0xff] %vm1088_vm0, %v1014_v37 }
 0x2e4   :  { %v1083_v57 = vpop.f32.mrf.mxu3 }
 0x2e5   :  { %v1084_v59 = vadd.f32 %v1557_v35, %v1083_v57 }
 0x2e6   :  { %v1015_v39 = vpop.f32.mrf.mxu2 }
 0x2e7   :  { %v1016_v41 = vadd.f32 %v1557_v35, %v1015_v39  ;;  %1151 = vst.msk [vmem:[%s1944_s7 + $0x1f0] sm:$0xff] %vm1088_vm0, %v1084_v59 }
 0x2e9   :  { %1124 = vst.msk [vmem:[%s1944_s7 + $0x118] sm:$0xff] %vm1088_vm0, %v1016_v41 }
 0x2ec   :  { %v1085_v61 = vpop.f32.mrf.mxu3 }
 0x2ed   :  { %v1086_v63 = vadd.f32 %v1557_v35, %v1085_v61 }
 0x2ee   :  { %v1018_v43 = vpop.f32.mrf.mxu2 }
 0x2ef   :  { %v1019_v46 = vadd.f32 %v1557_v35, %v1018_v43  ;;  %1152 = vst.msk [vmem:[%s1944_s7 + $0x1f8] sm:$0xff] %vm1088_vm0, %v1086_v63 }
 0x2f1   :  { %1125 = vst.msk [vmem:[%s1944_s7 + $0x120] sm:$0xff] %vm1088_vm0, %v1019_v46 }
 0x2f6   :  { %v1020_v48 = vpop.f32.mrf.mxu2 }
 0x2f7   :  { %v1021_v50 = vadd.f32 %v1557_v35, %v1020_v48 }
 0x2f9   :  { %1126 = vst.msk [vmem:[%s1944_s7 + $0x128] sm:$0xff] %vm1088_vm0, %v1021_v50 }
 0x2fe   :  { %v1023_v52 = vpop.f32.mrf.mxu2 }
 0x2ff   :  { %v1024_v54 = vadd.f32 %v1557_v35, %v1023_v52 }
 0x301   :  { %1127 = vst.msk [vmem:[%s1944_s7 + $0x130] sm:$0xff] %vm1088_vm0, %v1024_v54 }
 0x306   :  { %v1025_v56 = vpop.f32.mrf.mxu2 }
 0x307   :  { %v1026_v58 = vadd.f32 %v1557_v35, %v1025_v56 }
 0x309   :  { %1128 = vst.msk [vmem:[%s1944_s7 + $0x138] sm:$0xff] %vm1088_vm0, %v1026_v58 }
 0x30e   :  { %v1028_v60 = vpop.f32.mrf.mxu2 }
 0x30f   :  { %v1029_v62 = vadd.f32 %v1557_v35, %v1028_v60 }
 0x311   :  { %1129 = vst.msk [vmem:[%s1944_s7 + $0x140] sm:$0xff] %vm1088_vm0, %v1029_v62 }
 0x316   :  { %v1030_v0 = vpop.f32.mrf.mxu2 }
 0x317   :  { %v1031_v1 = vadd.f32 %v1557_v35, %v1030_v0 }
 0x319   :  { %1130 = vst.msk [vmem:[%s1944_s7 + $0x148] sm:$0xff] %vm1088_vm0, %v1031_v1 }
 0x31e   :  { %v1033_v2 = vpop.f32.mrf.mxu2 }
 0x31f   :  { %v1034_v3 = vadd.f32 %v1557_v35, %v1033_v2 }
 0x321   :  { %1131 = vst.msk [vmem:[%s1944_s7 + $0x150] sm:$0xff] %vm1088_vm0, %v1034_v3 }
 0x326   :  { %v1035_v4 = vpop.f32.mrf.mxu2 }
 0x327   :  { %v1036_v5 = vadd.f32 %v1557_v35, %v1035_v4 }
 0x329   :  { %1132 = vst.msk [vmem:[%s1944_s7 + $0x158] sm:$0xff] %vm1088_vm0, %v1036_v5 }
 0x32e   :  { %v1038_v6 = vpop.f32.mrf.mxu2 }
 0x32f   :  { %v1039_v7 = vadd.f32 %v1557_v35, %v1038_v6 }
 0x331   :  { %1133 = vst.msk [vmem:[%s1944_s7 + $0x160] sm:$0xff] %vm1088_vm0, %v1039_v7 }
 0x336   :  { %v1040_v8 = vpop.f32.mrf.mxu2 }
 0x337   :  { %v1041_v9 = vadd.f32 %v1557_v35, %v1040_v8 }
 0x339   :  { %1134 = vst.msk [vmem:[%s1944_s7 + $0x168] sm:$0xff] %vm1088_vm0, %v1041_v9 }
 0x33e   :  { %v1043_v10 = vpop.f32.mrf.mxu2 }
 0x33f   :  { %v1044_v11 = vadd.f32 %v1557_v35, %v1043_v10 }
 0x341   :  { %1135 = vst.msk [vmem:[%s1944_s7 + $0x170] sm:$0xff] %vm1088_vm0, %v1044_v11 }
 0x346   :  { %v1045_v12 = vpop.f32.mrf.mxu2 }
 0x347   :  { %v1046_v13 = vadd.f32 %v1557_v35, %v1045_v12 }
 0x349   :  { %1136 = vst.msk [vmem:[%s1944_s7 + $0x178] sm:$0xff] %vm1088_vm0, %v1046_v13 }
 0x34a   :  { %1157 = vsyncpa [#allocation3], 1 }
 0x34b   :  { %1158 = vsyncpa [#allocation5], 1 }
 0x34c   :  { %1159 = vsyncpa [#allocation8], 1 }

</bundles_post_ra>
